<compile_context>
chip_gen: v7x
topology: tpu7x:2x2x1
jax: 0.10.0
libtpu: 0.0.40
codegen_flags: <defaults>
</compile_context>

<pallas_src>
import functools

import jax
import jax.numpy as jnp
from jax.experimental import pallas as pl
from jax.experimental.pallas import tpu as pltpu


# ---------------------------------------------------------------------------
# Fused kernel: conv1(s=2)+ABN1+conv2(s=1)+ABN2 for one (batch, H-tile) block
# ---------------------------------------------------------------------------
def _unet_encoder_block_kernel(x_ref, w1_ref, b1_ref, w2_ref, b2_ref, o_ref,
                               y1p_ref, *, H1, W1, TH, Cp, Cout, slope):
    """
    x_ref  : ((TH+4)*W2, 4*Cin) bf16  flattened s2d input window (TH+3 used plane rows
                                      + 1 slack row), W2 = W1+1; channel = parity*Cin+c.
    w1_ref : (4, 4*Cin, Cp)     bf16  conv1 weights per (qh,qw) parity group, BN1 folded.
    b1_ref : (1, Cp)            f32   BN1 bias (beta - mean*scale), zero padded.
    w2_ref : (9, Cp, Cp)        bf16  conv2 weights, BN2 scale folded, tap-major.
    b2_ref : (1, Cp)            f32   BN2 bias, zero padded.
    o_ref  : (TH, W1, Cout)     bf16  output tile (un-padded channels).
    y1p_ref: (SR, Cp)           bf16  flat scratch: 16 zero lead rows + conv1 slab + tail.
    """
    t = pl.program_id(1)
    W2 = W1 + 1                     # conv1/conv2 slab row stride (1 throw-away column)
    M1 = (TH + 2) * W2              # conv1 slab rows (TH+2 rows incl. 1-row halo)
    M2 = TH * W2                    # conv2 slab rows
    LEAD = 16                       # zero rows in front of the slab (conv2 left-pad src)

    # ---- conv1 (3x3, stride 2) + BN1: 4 deep-K matmuls on contiguous flat windows ----
    acc1 = jnp.zeros((M1, Cp), jnp.float32)
    for q in range(4):
        qh, qw = divmod(q, 2)
        win = x_ref[pl.ds(qh * W2 + qw, M1), :]                       # (M1, 4*Cin)
        acc1 = acc1 + jnp.dot(win, w1_ref[q],
                              preferred_element_type=jnp.float32)
    y1 = acc1 + b1_ref[...]
    y1 = jnp.maximum(y1, slope * y1)                                  # leaky_relu(0.01)

    # Zero (a) the wrap/garbage column of every slab row (it doubles as conv2's
    # left/right zero padding) and (b) rows whose global conv1 row is outside the
    # image (conv2's top/bottom zero padding at image boundaries).
    m_f = jax.lax.broadcasted_iota(jnp.int32, (M1, 1), 0).astype(jnp.float32)
    row_f = jnp.floor((m_f + 0.5) / W2)            # exact integer rows (guarded floor)
    col_f = m_f - row_f * W2
    g = row_f + (t * TH - 1).astype(jnp.float32)   # global conv1 row of this slab row
    keep = (col_f < W1) & (g >= 0.0) & (g < H1)
    y1 = jnp.where(keep, y1, 0.0).astype(jnp.bfloat16)

    # ---- stash the conv1 slab (bf16) into VMEM with ONE aligned full-ref store ----
    lead = jnp.zeros((LEAD, Cp), jnp.bfloat16)
    tail = jnp.zeros((y1p_ref.shape[0] - LEAD - M1, Cp), jnp.bfloat16)
    y1p_ref[...] = jnp.concatenate([lead, y1, tail], axis=0)

    # ---- conv2 (3x3, stride 1, pad 1) + BN2: 9 taps = contiguous flat scratch slices --
    acc2 = jnp.zeros((M2, Cp), jnp.float32)
    for dh in range(3):
        for dw in range(3):
            start = LEAD - 1 + dh * W2 + dw
            win = y1p_ref[pl.ds(start, M2), :]                        # (M2, Cp) bf16
            acc2 = acc2 + jnp.dot(win, w2_ref[dh * 3 + dw],
                                  preferred_element_type=jnp.float32)
    y2 = acc2 + b2_ref[...]
    y2 = jnp.maximum(y2, slope * y2)

    # Drop the throw-away column and the padded channels at the store.
    for r in range(TH):
        o_ref[r] = y2[r * W2:r * W2 + W1, :Cout].astype(o_ref.dtype)


def _auto_tile_rows(H1, W1, C4, Cp, Cout, budget_bytes=20 * 1024 * 1024):
    """Largest H-tile that keeps blocks + scratch + accumulators under the budget."""
    W2 = W1 + 1
    for th in range(min(H1, 64), 0, -1):
        m1 = (th + 2) * W2
        m2 = th * W2
        scratch = (16 + ((m1 + 16) // 16) * 16) * Cp * 2
        x_blk = 2 * (th + 4) * W2 * C4 * 2
        o_blk = 2 * th * W1 * Cout * 2
        wts = 2 * (4 * C4 + 9 * Cp) * Cp * 2
        accs = (m1 + m2) * Cp * 4 + m1 * Cp * 2
        if scratch + x_blk + o_blk + wts + accs <= budget_bytes:
            return th
    return 1


# ---------------------------------------------------------------------------
# Wrapper: layout plumbing (single ~1x-sized bf16 copy of the input, no 9x im2col)
# ---------------------------------------------------------------------------
def unet_encoder_block(x_nhwc, params, *, slope=0.01, out_dtype=jnp.bfloat16,
                       tile_rows=None):
    """x_nhwc: [N, H, W, Cin] f32. Returns [N, ceil(H/2), ceil(W/2), Cout] (out_dtype)."""
    N, H, W, Cin = x_nhwc.shape
    w1, w2 = params["w1"], params["w2"]          # (3,3,Cin,Cout), (3,3,Cout,Cout)
    Cout = w1.shape[-1]
    H1 = (H - 1) // 2 + 1
    W1 = (W - 1) // 2 + 1
    W2 = W1 + 1
    C4 = 4 * Cin
    Cp = ((Cout + 127) // 128) * 128             # lane-dense internal channel width

    if tile_rows is None:
        tile_rows = _auto_tile_rows(H1, W1, C4, Cp, Cout)
    TH = max(1, min(int(tile_rows), H1))
    T = -(-H1 // TH)
    H1t = T * TH

    # Fold BN scales into the bias-free conv weights; bias = beta - mean*scale.
    w1f = w1 * params["bn1_scale"][None, None, None, :]
    w1f = jnp.pad(w1f, ((0, 0), (0, 0), (0, 0), (0, Cp - Cout)))
    # conv1 weights regrouped by (qh,qw) = (dh//2, dw//2); row index = (ph*2+pw)*Cin + c.
    w1q = jnp.zeros((2, 2, 2, 2, Cin, Cp), w1f.dtype)
    for dh in range(3):
        for dw in range(3):
            w1q = w1q.at[dh // 2, dw // 2, dh % 2, dw % 2].set(w1f[dh, dw])
    w1q = w1q.reshape(4, C4, Cp).astype(jnp.bfloat16)

    w2f = w2 * params["bn2_scale"][None, None, None, :]
    w2f = jnp.pad(w2f, ((0, 0), (0, 0), (0, Cp - Cout), (0, Cp - Cout)))
    w2k = w2f.reshape(9, Cp, Cp).astype(jnp.bfloat16)

    b1k = jnp.pad(params["bn1_bias"], (0, Cp - Cout)).reshape(1, Cp).astype(jnp.float32)
    b2k = jnp.pad(params["bn2_bias"], (0, Cp - Cout)).reshape(1, Cp).astype(jnp.float32)

    # Input: spatial zero pad (conv padding=1), 2x2 space-to-depth into the channel dim
    # so every stride-2 tap is a contiguous slice, then overlapping H-tile windows
    # (TH+3 plane rows used per tile = TH+2 conv1 rows incl. the recomputed 1-row halo).
    xb = x_nhwc.astype(jnp.bfloat16)
    xp = jnp.pad(xb, ((0, 0),
                      (1, 2 * (H1 + 1) - 1 - H),
                      (1, 2 * (W1 + 1) - 1 - W),
                      (0, 0)))
    s2d = xp.reshape(N, H1 + 1, 2, W2, 2, Cin).transpose(0, 1, 3, 2, 4, 5)
    s2d = s2d.reshape(N, H1 + 1, W2, C4)
    s2d = jnp.pad(s2d, ((0, 0), (1, H1t - H1 + 2), (0, 0), (0, 0)))   # (N, H1t+4, W2, C4)
    x_tiles = jnp.stack([s2d[:, t * TH:t * TH + TH + 4] for t in range(T)], axis=1)
    x_tiles = x_tiles.reshape(N, T, (TH + 4) * W2, C4)

    M1 = (TH + 2) * W2
    LEAD = 16
    SR = LEAD + ((M1 + 16) // 16) * 16           # scratch rows (multiple of 16, > M1)

    kernel = functools.partial(_unet_encoder_block_kernel,
                               H1=H1, W1=W1, TH=TH, Cp=Cp, Cout=Cout, slope=slope)
    out = pl.pallas_call(
        kernel,
        out_shape=jax.ShapeDtypeStruct((N, H1t, W1, Cout), out_dtype),
        grid_spec=pltpu.PrefetchScalarGridSpec(
            num_scalar_prefetch=0,
            grid=(N, T),
            in_specs=[
                pl.BlockSpec((None, None, (TH + 4) * W2, C4),
                             lambda n, t: (n, t, 0, 0)),
                pl.BlockSpec((4, C4, Cp), lambda n, t: (0, 0, 0)),    # resident weights
                pl.BlockSpec((1, Cp), lambda n, t: (0, 0)),           # resident bias
                pl.BlockSpec((9, Cp, Cp), lambda n, t: (0, 0, 0)),    # resident weights
                pl.BlockSpec((1, Cp), lambda n, t: (0, 0)),           # resident bias
            ],
            out_specs=pl.BlockSpec((None, TH, W1, Cout), lambda n, t: (n, t, 0, 0)),
            scratch_shapes=[pltpu.VMEM((SR, Cp), jnp.bfloat16)],
        ),
        compiler_params=pltpu.CompilerParams(
            dimension_semantics=("parallel", "parallel"),
            vmem_limit_bytes=64 * 1024 * 1024),
    )(x_tiles, w1q, b1k, w2k, b2k)

    return out if H1t == H1 else out[:, :H1]


# ---------------------------------------------------------------------------
# Pure-JAX reference with the same quantization points as the kernel
# ---------------------------------------------------------------------------
def _reference_forward(x_nhwc, params, *, slope=0.01, out_dtype=jnp.bfloat16):
    def rnd(a):
        return a.astype(jnp.bfloat16).astype(jnp.float32)

    def conv(x, w, stride):
        return jax.lax.conv_general_dilated(
            x, w, window_strides=(stride, stride), padding=((1, 1), (1, 1)),
            dimension_numbers=("NHWC", "HWIO", "NHWC"))

    w1f = rnd(params["w1"] * params["bn1_scale"][None, None, None, :])
    w2f = rnd(params["w2"] * params["bn2_scale"][None, None, None, :])
    y = conv(rnd(x_nhwc), w1f, 2) + params["bn1_bias"]
    y = jnp.maximum(y, slope * y)
    y = rnd(y)                       # kernel keeps the conv1 activation in bf16
    y = conv(y, w2f, 1) + params["bn2_bias"]
    y = jnp.maximum(y, slope * y)
    return y.astype(out_dtype)


def init_params(key, in_filters, out_filters, eps=1e-5):
    keys = jax.random.split(key, 8)

    def conv_w(k, cin, cout):
        fan_in = cin * 9
        return jax.random.normal(k, (3, 3, cin, cout), jnp.float32) / jnp.sqrt(fan_in)

    def bn(kg, kb, km, c):
        gamma = 1.0 + 0.1 * jax.random.normal(kg, (c,), jnp.float32)
        beta = 0.1 * jax.random.normal(kb, (c,), jnp.float32)
        mean = 0.1 * jax.random.normal(km, (c,), jnp.float32)
        var = jnp.linspace(0.5, 1.5, c).astype(jnp.float32)
        scale = gamma * jax.lax.rsqrt(var + eps)
        bias = beta - mean * scale
        return scale, bias

    s1, b1 = bn(keys[2], keys[3], keys[4], out_filters)
    s2, b2 = bn(keys[5], keys[6], keys[7], out_filters)
    return {
        "w1": conv_w(keys[0], in_filters, out_filters),
        "w2": conv_w(keys[1], out_filters, out_filters),
        "bn1_scale": s1, "bn1_bias": b1,
        "bn2_scale": s2, "bn2_bias": b2,
    }


if __name__ == "__main__":
    key = jax.random.PRNGKey(0)
    kx, kp = jax.random.split(key)

    N, Cin, H, W = 2, 4, 16, 16              # PyTorch-style NCHW input shape
    Cout = 8

    x_nchw = jax.random.normal(kx, (N, Cin, H, W), jnp.float32)
    x_nhwc = jnp.transpose(x_nchw, (0, 2, 3, 1))     # NHWC layout for the kernel

    params = init_params(kp, Cin, Cout)

    # tile_rows=4 -> two H-tiles per image, exercising the recomputed-halo path.
    fwd = jax.jit(functools.partial(unet_encoder_block, tile_rows=4))
    out = jax.block_until_ready(fwd(x_nhwc, params))  # [N, H/2, W/2, Cout] bf16

    assert out.shape == (N, H // 2, W // 2, Cout), out.shape
    out_f32 = out.astype(jnp.float32)
    assert bool(jnp.all(jnp.isfinite(out_f32)))

    ref = _reference_forward(x_nhwc, params).astype(jnp.float32)
    max_err = float(jnp.max(jnp.abs(out_f32 - ref)))
    assert max_err < 5e-2, f"kernel deviates from reference: max_err={max_err}"

    print("KERNEL_OK")
</pallas_src>

<mosaic_0001>
module attributes {stable_mosaic.version = 11 : i64} {
  func.func @_unet_encoder_block_kernel(%arg0: i32, %arg1: i32, %arg2: memref<1x1x72x16xbf16, #tpu.memory_space<vmem>>, %arg3: memref<4x16x128xbf16, #tpu.memory_space<vmem>>, %arg4: memref<1x128xf32, #tpu.memory_space<vmem>>, %arg5: memref<9x128x128xbf16, #tpu.memory_space<vmem>>, %arg6: memref<1x128xf32, #tpu.memory_space<vmem>>, %arg7: memref<1x4x8x8xbf16, #tpu.memory_space<vmem>>, %arg8: memref<80x128xbf16, #tpu.memory_space<vmem>>) attributes {dimension_semantics = [#tpu.dimension_semantics<parallel>, #tpu.dimension_semantics<parallel>], iteration_bounds = array<i64: 2, 2>, scalar_prefetch = 0 : i64, scratch_operands = 1 : i64, tpu.core_type = #tpu.core_type<tc>, window_params = [{transform_indices = @transform_0, window_bounds = array<i64: 1, 1, 72, 16>}, {pipeline_mode = #tpu.pipeline_mode<synchronous>, transform_indices = @transform_1, window_bounds = array<i64: 4, 16, 128>}, {pipeline_mode = #tpu.pipeline_mode<synchronous>, transform_indices = @transform_2, window_bounds = array<i64: 1, 128>}, {pipeline_mode = #tpu.pipeline_mode<synchronous>, transform_indices = @transform_3, window_bounds = array<i64: 9, 128, 128>}, {pipeline_mode = #tpu.pipeline_mode<synchronous>, transform_indices = @transform_4, window_bounds = array<i64: 1, 128>}, {transform_indices = @transform_5, window_bounds = array<i64: 1, 4, 8, 8>}]} {
    %cst = arith.constant 0.000000e+00 : f32
    %0 = vector.broadcast %cst : f32 to vector<54x128xf32>
    %c0 = arith.constant 0 : index
    %c0_0 = arith.constant 0 : index
    %c0_1 = arith.constant 0 : index
    %c0_2 = arith.constant 0 : index
    %1 = vector.load %arg2[%c0, %c0_0, %c0_1, %c0_2] : memref<1x1x72x16xbf16, #tpu.memory_space<vmem>>, vector<1x1x54x16xbf16>
    %2 = vector.shape_cast %1 : vector<1x1x54x16xbf16> to vector<54x16xbf16>
    %c0_3 = arith.constant 0 : index
    %c0_4 = arith.constant 0 : index
    %c0_5 = arith.constant 0 : index
    %3 = vector.load %arg3[%c0_3, %c0_4, %c0_5] : memref<4x16x128xbf16, #tpu.memory_space<vmem>>, vector<1x16x128xbf16>
    %4 = vector.shape_cast %3 : vector<1x16x128xbf16> to vector<16x128xbf16>
    %cst_6 = arith.constant dense<0.000000e+00> : vector<54x128xf32>
    %5 = tpu.matmul %2, %4, %cst_6 {dimension_numbers = #tpu.dot_dimension_numbers<[1], [0], [0], [1], [0, 0, 1, 1], [], []>} : vector<54x16xbf16>, vector<16x128xbf16>, vector<54x128xf32> -> vector<54x128xf32>
    %6 = arith.addf %0, %5 : vector<54x128xf32>
    %c0_7 = arith.constant 0 : index
    %c0_8 = arith.constant 0 : index
    %c1 = arith.constant 1 : index
    %c0_9 = arith.constant 0 : index
    %7 = vector.load %arg2[%c0_7, %c0_8, %c1, %c0_9] : memref<1x1x72x16xbf16, #tpu.memory_space<vmem>>, vector<1x1x54x16xbf16>
    %8 = vector.shape_cast %7 : vector<1x1x54x16xbf16> to vector<54x16xbf16>
    %c1_10 = arith.constant 1 : index
    %c0_11 = arith.constant 0 : index
    %c0_12 = arith.constant 0 : index
    %9 = vector.load %arg3[%c1_10, %c0_11, %c0_12] : memref<4x16x128xbf16, #tpu.memory_space<vmem>>, vector<1x16x128xbf16>
    %10 = vector.shape_cast %9 : vector<1x16x128xbf16> to vector<16x128xbf16>
    %cst_13 = arith.constant dense<0.000000e+00> : vector<54x128xf32>
    %11 = tpu.matmul %8, %10, %cst_13 {dimension_numbers = #tpu.dot_dimension_numbers<[1], [0], [0], [1], [0, 0, 1, 1], [], []>} : vector<54x16xbf16>, vector<16x128xbf16>, vector<54x128xf32> -> vector<54x128xf32>
    %12 = arith.addf %6, %11 : vector<54x128xf32>
    %c0_14 = arith.constant 0 : index
    %c0_15 = arith.constant 0 : index
    %c9 = arith.constant 9 : index
    %c0_16 = arith.constant 0 : index
    %13 = vector.load %arg2[%c0_14, %c0_15, %c9, %c0_16] : memref<1x1x72x16xbf16, #tpu.memory_space<vmem>>, vector<1x1x54x16xbf16>
    %14 = vector.shape_cast %13 : vector<1x1x54x16xbf16> to vector<54x16xbf16>
    %c2 = arith.constant 2 : index
    %c0_17 = arith.constant 0 : index
    %c0_18 = arith.constant 0 : index
    %15 = vector.load %arg3[%c2, %c0_17, %c0_18] : memref<4x16x128xbf16, #tpu.memory_space<vmem>>, vector<1x16x128xbf16>
    %16 = vector.shape_cast %15 : vector<1x16x128xbf16> to vector<16x128xbf16>
    %cst_19 = arith.constant dense<0.000000e+00> : vector<54x128xf32>
    %17 = tpu.matmul %14, %16, %cst_19 {dimension_numbers = #tpu.dot_dimension_numbers<[1], [0], [0], [1], [0, 0, 1, 1], [], []>} : vector<54x16xbf16>, vector<16x128xbf16>, vector<54x128xf32> -> vector<54x128xf32>
    %18 = arith.addf %12, %17 : vector<54x128xf32>
    %c0_20 = arith.constant 0 : index
    %c0_21 = arith.constant 0 : index
    %c10 = arith.constant 10 : index
    %c0_22 = arith.constant 0 : index
    %19 = vector.load %arg2[%c0_20, %c0_21, %c10, %c0_22] : memref<1x1x72x16xbf16, #tpu.memory_space<vmem>>, vector<1x1x54x16xbf16>
    %20 = vector.shape_cast %19 : vector<1x1x54x16xbf16> to vector<54x16xbf16>
    %c3 = arith.constant 3 : index
    %c0_23 = arith.constant 0 : index
    %c0_24 = arith.constant 0 : index
    %21 = vector.load %arg3[%c3, %c0_23, %c0_24] : memref<4x16x128xbf16, #tpu.memory_space<vmem>>, vector<1x16x128xbf16>
    %22 = vector.shape_cast %21 : vector<1x16x128xbf16> to vector<16x128xbf16>
    %cst_25 = arith.constant dense<0.000000e+00> : vector<54x128xf32>
    %23 = tpu.matmul %20, %22, %cst_25 {dimension_numbers = #tpu.dot_dimension_numbers<[1], [0], [0], [1], [0, 0, 1, 1], [], []>} : vector<54x16xbf16>, vector<16x128xbf16>, vector<54x128xf32> -> vector<54x128xf32>
    %24 = arith.addf %18, %23 : vector<54x128xf32>
    %c0_26 = arith.constant 0 : index
    %c0_27 = arith.constant 0 : index
    %25 = vector.load %arg4[%c0_26, %c0_27] : memref<1x128xf32, #tpu.memory_space<vmem>>, vector<1x128xf32>
    %26 = vector.broadcast %25 : vector<1x128xf32> to vector<54x128xf32>
    %27 = arith.addf %24, %26 : vector<54x128xf32>
    %cst_28 = arith.constant 0.00999999977 : f32
    %28 = vector.broadcast %cst_28 : f32 to vector<54x128xf32>
    %29 = arith.mulf %28, %27 : vector<54x128xf32>
    %30 = arith.maximumf %27, %29 : vector<54x128xf32>
    %31 = tpu.iota {dimensions = array<i32: 0>} : vector<54x1xi32>
    %32 = arith.sitofp %31 : vector<54x1xi32> to vector<54x1xf32>
    %cst_29 = arith.constant 5.000000e-01 : f32
    %33 = vector.broadcast %cst_29 : f32 to vector<54x1xf32>
    %34 = arith.addf %32, %33 : vector<54x1xf32>
    %cst_30 = arith.constant 9.000000e+00 : f32
    %35 = vector.broadcast %cst_30 : f32 to vector<54x1xf32>
    %36 = arith.divf %34, %35 : vector<54x1xf32>
    %37 = math.floor %36 : vector<54x1xf32>
    %cst_31 = arith.constant 9.000000e+00 : f32
    %38 = vector.broadcast %cst_31 : f32 to vector<54x1xf32>
    %39 = arith.mulf %37, %38 : vector<54x1xf32>
    %40 = arith.subf %32, %39 : vector<54x1xf32>
    %c4_i32 = arith.constant 4 : i32
    %41 = arith.muli %arg1, %c4_i32 : i32
    %c1_i32 = arith.constant 1 : i32
    %42 = arith.subi %41, %c1_i32 : i32
    %43 = arith.sitofp %42 : i32 to f32
    %44 = vector.broadcast %43 : f32 to vector<54x1xf32>
    %45 = arith.addf %37, %44 : vector<54x1xf32>
    %cst_32 = arith.constant 8.000000e+00 : f32
    %46 = vector.broadcast %cst_32 : f32 to vector<54x1xf32>
    %47 = arith.cmpf olt, %40, %46 : vector<54x1xf32>
    %cst_33 = arith.constant 0.000000e+00 : f32
    %48 = vector.broadcast %cst_33 : f32 to vector<54x1xf32>
    %49 = arith.cmpf oge, %45, %48 : vector<54x1xf32>
    %50 = arith.andi %47, %49 : vector<54x1xi1>
    %cst_34 = arith.constant 8.000000e+00 : f32
    %51 = vector.broadcast %cst_34 : f32 to vector<54x1xf32>
    %52 = arith.cmpf olt, %45, %51 : vector<54x1xf32>
    %53 = arith.andi %50, %52 : vector<54x1xi1>
    %cst_35 = arith.constant 0.000000e+00 : f32
    %54 = vector.shape_cast %53 : vector<54x1xi1> to vector<54x1xi1>
    %55 = vector.broadcast %54 : vector<54x1xi1> to vector<54x128xi1>
    %56 = vector.broadcast %cst_35 : f32 to vector<54x128xf32>
    %57 = arith.select %55, %30, %56 : vector<54x128xi1>, vector<54x128xf32>
    %58 = arith.truncf %57 : vector<54x128xf32> to vector<54x128xbf16>
    %cst_36 = arith.constant 0.000000e+00 : bf16
    %59 = vector.broadcast %cst_36 : bf16 to vector<16x128xbf16>
    %cst_37 = arith.constant 0.000000e+00 : bf16
    %60 = vector.broadcast %cst_37 : bf16 to vector<10x128xbf16>
    %61 = tpu.concatenate %59, %58, %60 in 0 : vector<16x128xbf16>, vector<54x128xbf16>, vector<10x128xbf16> -> vector<80x128xbf16>
    %c0_38 = arith.constant 0 : index
    %c0_39 = arith.constant 0 : index
    %62 = vector.load %arg8[%c0_38, %c0_39] : memref<80x128xbf16, #tpu.memory_space<vmem>>, vector<80x128xbf16>
    tpu.vector_store %arg8[%c0_38, %c0_39], %61 {strides = array<i32>} : memref<80x128xbf16, #tpu.memory_space<vmem>>, vector<80x128xbf16>,
    %cst_40 = arith.constant 0.000000e+00 : f32
    %63 = vector.broadcast %cst_40 : f32 to vector<36x128xf32>
    %c15 = arith.constant 15 : index
    %c0_41 = arith.constant 0 : index
    %64 = vector.load %arg8[%c15, %c0_41] : memref<80x128xbf16, #tpu.memory_space<vmem>>, vector<36x128xbf16>
    %c0_42 = arith.constant 0 : index
    %c0_43 = arith.constant 0 : index
    %c0_44 = arith.constant 0 : index
    %65 = vector.load %arg5[%c0_42, %c0_43, %c0_44] : memref<9x128x128xbf16, #tpu.memory_space<vmem>>, vector<1x128x128xbf16>
    %66 = vector.shape_cast %65 : vector<1x128x128xbf16> to vector<128x128xbf16>
    %cst_45 = arith.constant dense<0.000000e+00> : vector<36x128xf32>
    %67 = tpu.matmul %64, %66, %cst_45 {dimension_numbers = #tpu.dot_dimension_numbers<[1], [0], [0], [1], [0, 0, 1, 1], [], []>} : vector<36x128xbf16>, vector<128x128xbf16>, vector<36x128xf32> -> vector<36x128xf32>
    %68 = arith.addf %63, %67 : vector<36x128xf32>
    %c16 = arith.constant 16 : index
    %c0_46 = arith.constant 0 : index
    %69 = vector.load %arg8[%c16, %c0_46] : memref<80x128xbf16, #tpu.memory_space<vmem>>, vector<36x128xbf16>
    %c1_47 = arith.constant 1 : index
    %c0_48 = arith.constant 0 : index
    %c0_49 = arith.constant 0 : index
    %70 = vector.load %arg5[%c1_47, %c0_48, %c0_49] : memref<9x128x128xbf16, #tpu.memory_space<vmem>>, vector<1x128x128xbf16>
    %71 = vector.shape_cast %70 : vector<1x128x128xbf16> to vector<128x128xbf16>
    %cst_50 = arith.constant dense<0.000000e+00> : vector<36x128xf32>
    %72 = tpu.matmul %69, %71, %cst_50 {dimension_numbers = #tpu.dot_dimension_numbers<[1], [0], [0], [1], [0, 0, 1, 1], [], []>} : vector<36x128xbf16>, vector<128x128xbf16>, vector<36x128xf32> -> vector<36x128xf32>
    %73 = arith.addf %68, %72 : vector<36x128xf32>
    %c17 = arith.constant 17 : index
    %c0_51 = arith.constant 0 : index
    %74 = vector.load %arg8[%c17, %c0_51] : memref<80x128xbf16, #tpu.memory_space<vmem>>, vector<36x128xbf16>
    %c2_52 = arith.constant 2 : index
    %c0_53 = arith.constant 0 : index
    %c0_54 = arith.constant 0 : index
    %75 = vector.load %arg5[%c2_52, %c0_53, %c0_54] : memref<9x128x128xbf16, #tpu.memory_space<vmem>>, vector<1x128x128xbf16>
    %76 = vector.shape_cast %75 : vector<1x128x128xbf16> to vector<128x128xbf16>
    %cst_55 = arith.constant dense<0.000000e+00> : vector<36x128xf32>
    %77 = tpu.matmul %74, %76, %cst_55 {dimension_numbers = #tpu.dot_dimension_numbers<[1], [0], [0], [1], [0, 0, 1, 1], [], []>} : vector<36x128xbf16>, vector<128x128xbf16>, vector<36x128xf32> -> vector<36x128xf32>
    %78 = arith.addf %73, %77 : vector<36x128xf32>
    %c24 = arith.constant 24 : index
    %c0_56 = arith.constant 0 : index
    %79 = vector.load %arg8[%c24, %c0_56] : memref<80x128xbf16, #tpu.memory_space<vmem>>, vector<36x128xbf16>
    %c3_57 = arith.constant 3 : index
    %c0_58 = arith.constant 0 : index
    %c0_59 = arith.constant 0 : index
    %80 = vector.load %arg5[%c3_57, %c0_58, %c0_59] : memref<9x128x128xbf16, #tpu.memory_space<vmem>>, vector<1x128x128xbf16>
    %81 = vector.shape_cast %80 : vector<1x128x128xbf16> to vector<128x128xbf16>
    %cst_60 = arith.constant dense<0.000000e+00> : vector<36x128xf32>
    %82 = tpu.matmul %79, %81, %cst_60 {dimension_numbers = #tpu.dot_dimension_numbers<[1], [0], [0], [1], [0, 0, 1, 1], [], []>} : vector<36x128xbf16>, vector<128x128xbf16>, vector<36x128xf32> -> vector<36x128xf32>
    %83 = arith.addf %78, %82 : vector<36x128xf32>
    %c25 = arith.constant 25 : index
    %c0_61 = arith.constant 0 : index
    %84 = vector.load %arg8[%c25, %c0_61] : memref<80x128xbf16, #tpu.memory_space<vmem>>, vector<36x128xbf16>
    %c4 = arith.constant 4 : index
    %c0_62 = arith.constant 0 : index
    %c0_63 = arith.constant 0 : index
    %85 = vector.load %arg5[%c4, %c0_62, %c0_63] : memref<9x128x128xbf16, #tpu.memory_space<vmem>>, vector<1x128x128xbf16>
    %86 = vector.shape_cast %85 : vector<1x128x128xbf16> to vector<128x128xbf16>
    %cst_64 = arith.constant dense<0.000000e+00> : vector<36x128xf32>
    %87 = tpu.matmul %84, %86, %cst_64 {dimension_numbers = #tpu.dot_dimension_numbers<[1], [0], [0], [1], [0, 0, 1, 1], [], []>} : vector<36x128xbf16>, vector<128x128xbf16>, vector<36x128xf32> -> vector<36x128xf32>
    %88 = arith.addf %83, %87 : vector<36x128xf32>
    %c26 = arith.constant 26 : index
    %c0_65 = arith.constant 0 : index
    %89 = vector.load %arg8[%c26, %c0_65] : memref<80x128xbf16, #tpu.memory_space<vmem>>, vector<36x128xbf16>
    %c5 = arith.constant 5 : index
    %c0_66 = arith.constant 0 : index
    %c0_67 = arith.constant 0 : index
    %90 = vector.load %arg5[%c5, %c0_66, %c0_67] : memref<9x128x128xbf16, #tpu.memory_space<vmem>>, vector<1x128x128xbf16>
    %91 = vector.shape_cast %90 : vector<1x128x128xbf16> to vector<128x128xbf16>
    %cst_68 = arith.constant dense<0.000000e+00> : vector<36x128xf32>
    %92 = tpu.matmul %89, %91, %cst_68 {dimension_numbers = #tpu.dot_dimension_numbers<[1], [0], [0], [1], [0, 0, 1, 1], [], []>} : vector<36x128xbf16>, vector<128x128xbf16>, vector<36x128xf32> -> vector<36x128xf32>
    %93 = arith.addf %88, %92 : vector<36x128xf32>
    %c33 = arith.constant 33 : index
    %c0_69 = arith.constant 0 : index
    %94 = vector.load %arg8[%c33, %c0_69] : memref<80x128xbf16, #tpu.memory_space<vmem>>, vector<36x128xbf16>
    %c6 = arith.constant 6 : index
    %c0_70 = arith.constant 0 : index
    %c0_71 = arith.constant 0 : index
    %95 = vector.load %arg5[%c6, %c0_70, %c0_71] : memref<9x128x128xbf16, #tpu.memory_space<vmem>>, vector<1x128x128xbf16>
    %96 = vector.shape_cast %95 : vector<1x128x128xbf16> to vector<128x128xbf16>
    %cst_72 = arith.constant dense<0.000000e+00> : vector<36x128xf32>
    %97 = tpu.matmul %94, %96, %cst_72 {dimension_numbers = #tpu.dot_dimension_numbers<[1], [0], [0], [1], [0, 0, 1, 1], [], []>} : vector<36x128xbf16>, vector<128x128xbf16>, vector<36x128xf32> -> vector<36x128xf32>
    %98 = arith.addf %93, %97 : vector<36x128xf32>
    %c34 = arith.constant 34 : index
    %c0_73 = arith.constant 0 : index
    %99 = vector.load %arg8[%c34, %c0_73] : memref<80x128xbf16, #tpu.memory_space<vmem>>, vector<36x128xbf16>
    %c7 = arith.constant 7 : index
    %c0_74 = arith.constant 0 : index
    %c0_75 = arith.constant 0 : index
    %100 = vector.load %arg5[%c7, %c0_74, %c0_75] : memref<9x128x128xbf16, #tpu.memory_space<vmem>>, vector<1x128x128xbf16>
    %101 = vector.shape_cast %100 : vector<1x128x128xbf16> to vector<128x128xbf16>
    %cst_76 = arith.constant dense<0.000000e+00> : vector<36x128xf32>
    %102 = tpu.matmul %99, %101, %cst_76 {dimension_numbers = #tpu.dot_dimension_numbers<[1], [0], [0], [1], [0, 0, 1, 1], [], []>} : vector<36x128xbf16>, vector<128x128xbf16>, vector<36x128xf32> -> vector<36x128xf32>
    %103 = arith.addf %98, %102 : vector<36x128xf32>
    %c35 = arith.constant 35 : index
    %c0_77 = arith.constant 0 : index
    %104 = vector.load %arg8[%c35, %c0_77] : memref<80x128xbf16, #tpu.memory_space<vmem>>, vector<36x128xbf16>
    %c8 = arith.constant 8 : index
    %c0_78 = arith.constant 0 : index
    %c0_79 = arith.constant 0 : index
    %105 = vector.load %arg5[%c8, %c0_78, %c0_79] : memref<9x128x128xbf16, #tpu.memory_space<vmem>>, vector<1x128x128xbf16>
    %106 = vector.shape_cast %105 : vector<1x128x128xbf16> to vector<128x128xbf16>
    %cst_80 = arith.constant dense<0.000000e+00> : vector<36x128xf32>
    %107 = tpu.matmul %104, %106, %cst_80 {dimension_numbers = #tpu.dot_dimension_numbers<[1], [0], [0], [1], [0, 0, 1, 1], [], []>} : vector<36x128xbf16>, vector<128x128xbf16>, vector<36x128xf32> -> vector<36x128xf32>
    %108 = arith.addf %103, %107 : vector<36x128xf32>
    %c0_81 = arith.constant 0 : index
    %c0_82 = arith.constant 0 : index
    %109 = vector.load %arg6[%c0_81, %c0_82] : memref<1x128xf32, #tpu.memory_space<vmem>>, vector<1x128xf32>
    %110 = vector.broadcast %109 : vector<1x128xf32> to vector<36x128xf32>
    %111 = arith.addf %108, %110 : vector<36x128xf32>
    %cst_83 = arith.constant 0.00999999977 : f32
    %112 = vector.broadcast %cst_83 : f32 to vector<36x128xf32>
    %113 = arith.mulf %112, %111 : vector<36x128xf32>
    %114 = arith.maximumf %111, %113 : vector<36x128xf32>
    %115 = vector.extract_strided_slice %114 {offsets = [0, 0], sizes = [8, 8], strides = [1, 1]} : vector<36x128xf32> to vector<8x8xf32>
    %116 = arith.truncf %115 : vector<8x8xf32> to vector<8x8xbf16>
    %c0_84 = arith.constant 0 : index
    %c0_85 = arith.constant 0 : index
    %c0_86 = arith.constant 0 : index
    %c0_87 = arith.constant 0 : index
    %117 = vector.load %arg7[%c0_84, %c0_85, %c0_86, %c0_87] : memref<1x4x8x8xbf16, #tpu.memory_space<vmem>>, vector<1x1x8x8xbf16>
    %118 = vector.shape_cast %117 : vector<1x1x8x8xbf16> to vector<8x8xbf16>
    %119 = vector.shape_cast %116 : vector<8x8xbf16> to vector<1x1x8x8xbf16>
    tpu.vector_store %arg7[%c0_84, %c0_85, %c0_86, %c0_87], %119 {strides = array<i32>} : memref<1x4x8x8xbf16, #tpu.memory_space<vmem>>, vector<1x1x8x8xbf16>,
    %120 = vector.extract_strided_slice %114 {offsets = [9, 0], sizes = [8, 8], strides = [1, 1]} : vector<36x128xf32> to vector<8x8xf32>
    %121 = arith.truncf %120 : vector<8x8xf32> to vector<8x8xbf16>
    %c0_88 = arith.constant 0 : index
    %c1_89 = arith.constant 1 : index
    %c0_90 = arith.constant 0 : index
    %c0_91 = arith.constant 0 : index
    %122 = vector.load %arg7[%c0_88, %c1_89, %c0_90, %c0_91] : memref<1x4x8x8xbf16, #tpu.memory_space<vmem>>, vector<1x1x8x8xbf16>
    %123 = vector.shape_cast %122 : vector<1x1x8x8xbf16> to vector<8x8xbf16>
    %124 = vector.shape_cast %121 : vector<8x8xbf16> to vector<1x1x8x8xbf16>
    tpu.vector_store %arg7[%c0_88, %c1_89, %c0_90, %c0_91], %124 {strides = array<i32>} : memref<1x4x8x8xbf16, #tpu.memory_space<vmem>>, vector<1x1x8x8xbf16>,
    %125 = vector.extract_strided_slice %114 {offsets = [18, 0], sizes = [8, 8], strides = [1, 1]} : vector<36x128xf32> to vector<8x8xf32>
    %126 = arith.truncf %125 : vector<8x8xf32> to vector<8x8xbf16>
    %c0_92 = arith.constant 0 : index
    %c2_93 = arith.constant 2 : index
    %c0_94 = arith.constant 0 : index
    %c0_95 = arith.constant 0 : index
    %127 = vector.load %arg7[%c0_92, %c2_93, %c0_94, %c0_95] : memref<1x4x8x8xbf16, #tpu.memory_space<vmem>>, vector<1x1x8x8xbf16>
    %128 = vector.shape_cast %127 : vector<1x1x8x8xbf16> to vector<8x8xbf16>
    %129 = vector.shape_cast %126 : vector<8x8xbf16> to vector<1x1x8x8xbf16>
    tpu.vector_store %arg7[%c0_92, %c2_93, %c0_94, %c0_95], %129 {strides = array<i32>} : memref<1x4x8x8xbf16, #tpu.memory_space<vmem>>, vector<1x1x8x8xbf16>,
    %130 = vector.extract_strided_slice %114 {offsets = [27, 0], sizes = [8, 8], strides = [1, 1]} : vector<36x128xf32> to vector<8x8xf32>
    %131 = arith.truncf %130 : vector<8x8xf32> to vector<8x8xbf16>
    %c0_96 = arith.constant 0 : index
    %c3_97 = arith.constant 3 : index
    %c0_98 = arith.constant 0 : index
    %c0_99 = arith.constant 0 : index
    %132 = vector.load %arg7[%c0_96, %c3_97, %c0_98, %c0_99] : memref<1x4x8x8xbf16, #tpu.memory_space<vmem>>, vector<1x1x8x8xbf16>
    %133 = vector.shape_cast %132 : vector<1x1x8x8xbf16> to vector<8x8xbf16>
    %134 = vector.shape_cast %131 : vector<8x8xbf16> to vector<1x1x8x8xbf16>
    tpu.vector_store %arg7[%c0_96, %c3_97, %c0_98, %c0_99], %134 {strides = array<i32>} : memref<1x4x8x8xbf16, #tpu.memory_space<vmem>>, vector<1x1x8x8xbf16>,
    return
  }
  func.func @transform_0(%arg0: i32, %arg1: i32) -> (i32, i32, i32, i32) {
    %c0_i32 = arith.constant 0 : i32
    %c0_i32_0 = arith.constant 0 : i32
    %c0_i32_1 = arith.constant 0 : i32
    return %arg0, %arg1, %c0_i32, %c0_i32_0 : i32, i32, i32, i32
  }
  func.func @transform_1(%arg0: i32, %arg1: i32) -> (i32, i32, i32) {
    %c0_i32 = arith.constant 0 : i32
    %c0_i32_0 = arith.constant 0 : i32
    %c0_i32_1 = arith.constant 0 : i32
    %c0_i32_2 = arith.constant 0 : i32
    return %c0_i32, %c0_i32_0, %c0_i32_1 : i32, i32, i32
  }
  func.func @transform_2(%arg0: i32, %arg1: i32) -> (i32, i32) {
    %c0_i32 = arith.constant 0 : i32
    %c0_i32_0 = arith.constant 0 : i32
    %c0_i32_1 = arith.constant 0 : i32
    return %c0_i32, %c0_i32_0 : i32, i32
  }
  func.func @transform_3(%arg0: i32, %arg1: i32) -> (i32, i32, i32) {
    %c0_i32 = arith.constant 0 : i32
    %c0_i32_0 = arith.constant 0 : i32
    %c0_i32_1 = arith.constant 0 : i32
    %c0_i32_2 = arith.constant 0 : i32
    return %c0_i32, %c0_i32_0, %c0_i32_1 : i32, i32, i32
  }
  func.func @transform_4(%arg0: i32, %arg1: i32) -> (i32, i32) {
    %c0_i32 = arith.constant 0 : i32
    %c0_i32_0 = arith.constant 0 : i32
    %c0_i32_1 = arith.constant 0 : i32
    return %c0_i32, %c0_i32_0 : i32, i32
  }
  func.func @transform_5(%arg0: i32, %arg1: i32) -> (i32, i32, i32, i32) {
    %c0_i32 = arith.constant 0 : i32
    %c0_i32_0 = arith.constant 0 : i32
    %c0_i32_1 = arith.constant 0 : i32
    return %arg0, %arg1, %c0_i32, %c0_i32_0 : i32, i32, i32, i32
  }
}

</mosaic_0001>

<bundles_post_ra>
// kernel: unet_encoder_block.1
= control target key start
LH: loop header
LB: loop body
LE: loop exit
PB: predicated region body
PF: predicated region fallthrough
CT: control target
= control target key end

     0   :  { %s4359_s0 = inlined_call_operand.hbm [shape: bf16[2,2,72,16], index: 0, kind: input, shape index: {}]   ;;  %s4360_s1 = inlined_call_operand.hbm [shape: bf16[4,16,128], index: 1, kind: input, shape index: {}]   ;;  %s4361_s2 = inlined_call_operand.hbm [shape: f32[1,128], index: 2, kind: input, shape index: {}]   ;;  %s4362_s3 = inlined_call_operand.hbm [shape: bf16[9,128,128], index: 3, kind: input, shape index: {}]   ;;  %s4363_s4 = inlined_call_operand.hbm [shape: f32[1,128], index: 4, kind: input, shape index: {}]   ;;  %s4364_s5 = inlined_call_operand.hbm [shape: bf16[2,8,8,8], index: 5, kind: output, shape index: {}]  }
   0x1   :  { %4374 = sst [smem:[#allocation20_spill]] %s4360_s1 }
   0x2   :  { %4375 = sst [smem:[#allocation21_spill]] %s4361_s2 }
   0x3   :  { %4376 = sst [smem:[#allocation22_spill]] %s4362_s3 }
   0x4   :  { %4377 = sst [smem:[#allocation23_spill]] %s4364_s5 }
   0x5   :  { %10 = vsyncpa [#allocation4], 0 }
   0x6   :  { %12 = vsyncpa [#allocation4 + $0x1], 0 }
   0x7   :  { %13 = vsyncpa [#allocation7], 0 }
   0x8   :  { %14 = vsyncpa [#allocation10], 0 }
   0x9   :  { %15 = vsyncpa [#allocation5], 0 }
   0xa   :  { %17 = vsyncpa [#allocation5 + $0x1], 0  ;;  %s3572_s18 = smov 0   ;;  %s3574_s19 = smov 0  }
   0xb   :  { %s3576_s20 = smov 0   ;;  %s3578_s21 = smov 0  }
   0xc   :  { %s3580_s22 = smov 0   ;;  %s3582_s23 = smov 0  }
   0xd   :  { %s3584_s24 = smov 0   ;;  %s3586_s25 = smov 0  }
   0xe LB: > { %4378 = sst [smem:[#allocation17_spill]] %s3499_s18  ;;  %s2491_s26 = sadd.s32 4294967295, %s3527_s25   ;;  %s3527_s25 = sphi %s3586_s25, %s23_s25   ;;  %s3523_s24 = sphi %s3584_s24, %s4433_s24   ;;  %s3519_s23 = sphi %s3582_s23, %s4432_s23   ;;  %s3515_s22 = sphi %s3580_s22, %s4431_s22   ;;  %s3511_s21 = sphi %s3578_s21, %s4430_s21   ;;  %s3507_s20 = sphi %s3576_s20, %s4429_s20   ;;  %s3503_s19 = sphi %s3574_s19, %s4428_s19   ;;  %s3499_s18 = sphi %s3572_s18, %s4427_s18  }
   0xf   : > { %4379 = sst [smem:[#allocation18_spill]] %s3515_s22  ;;  %s2492_s27 = sadd.s32 4294967294, %s3527_s25  }
  0x10   : > { %p57_p0 = scmp.ne.s32.totalorder %s3503_s19, %s3499_s18  ;;  %p3616_p1 = scmp.eq.s32.totalorder %s2491_s26, 0 }
  0x11   : > { %p3620_p2 = scmp.eq.s32.totalorder %s2491_s26, 3  ;;  %p173_p3 = scmp.eq.s32.totalorder %s2492_s27, 3 }
  0x12   : > { %s4380_s28 = scalar_select %p3616_p1, 1, 0 }
  0x13   : > { %s4381_s29 = scalar_select %p3620_p2, 1, 0 }
  0x14   : > { %p3626_p4 = por %p3616_p1, %p57_p0  ;;  %p2493_p5 = scmp.ge.s32.totalorder %s3527_s25, 1 }
  0x15   : > { %p3631_p6 = por %p173_p3, %p57_p0  ;;  %p180_p7 = scmp.lt.s32.totalorder %s3527_s25, 5 }
  0x16   : > { %s4382_s30 = scalar_select %p3626_p4, 1, 0 }
  0x17   : > { %s4383_s6 = scalar_select %p3631_p6, 1, 0 }
  0x18   : > { %p3636_p8 = pnand %p2493_p5, %p180_p7  ;;  %s3529_s8 = smov [#allocation6]  }
  0x19   : > { %4384 = sst [smem:[#allocation19_spill]] %s4383_s6  ;;  %s192_s9 = sshll.u32 %s3529_s8, 4  ;;  %s3640_s9 = int_to_ptr.vmem [resolvable:$true] %s192_s9 }
  0x1a   : > { %s4385_s7 = scalar_select %p3636_p8, 1, 0 }
  0x1b   : > { %p3081_p9 = pneg %p3636_p8  ;;  %s3530_s11 = smov [#allocation9]  }
  0x1c   : > { %s216_s12 = sshll.u32 %s3530_s11, 4  ;;  %s3531_s13 = smov [#allocation8]   ;;  %s3650_s12 = int_to_ptr.vmem [resolvable:$true] %s216_s12 }
  0x1d   : > { %p3646_p10 = pnand %p3081_p9, %p3616_p1  ;;  %s3652_s14 = sshll.u32 %s3531_s13, 4  ;;  %s207_s14 = int_to_ptr.vmem [resolvable:$true] %s3652_s14 }
  0x1e   : > { %s4387_s1 = sld [smem:[#allocation20_spill]] }
  0x1f   : > { %p3662_p12 = pneg %p3646_p10 }
  0x24   : > { %s3279_s17 = scalar_lea.hbm %s4387_s1, 512 }
  0x25   : > { %p3280_p11 = scmp.ne.s32.totalorder %s4387_s1, %s3279_s17  ;;  %p3286_p3 = scmp.lt.u32.totalorder %s3279_s17, %s4387_s1 }
  0x27   : > { %p3282_p13 = pnand %p3662_p12, %p3280_p11 }
  0x29   : > { %p3283_p0 = pneg %p3282_p13 }
  0x2b   : > { %p3288_p5 = pnand %p3286_p3, %p3283_p0 }
  0x2d   : > { %3291 = shalt.err (!%p3288_p5)
}
  0x2e   : > { %s3292_s15 = scalar_lea.vmem %s3640_s9, 512  ;;  %p3300_p1 = scmp.lt.s32.totalorder %s3640_s9, %s3640_s9 }
  0x2f   : > { %p3293_p7 = scmp.ne.s32.totalorder %s3640_s9, %s3292_s15  ;;  %p3301_p4 = scmp.lt.s32.totalorder %s3292_s15, %s3292_s15 }
  0x31   : > { %p3295_p9 = pnand %p3293_p7, %p3662_p12  ;;  %p3302_p11 = por %p3301_p4, %p3300_p1 }
  0x33   : > { %p3296_p6 = pneg %p3295_p9 }
  0x35   : > { %p3303_p13 = pnand %p3302_p11, %p3296_p6 }
  0x37   : > { %3306 = shalt.err (!%p3303_p13)
}
  0x38   : > { %s4372_s16 = smov 64   ;;  %s4373_s17 = smov 4  }
  0x39   : > { %3084 = dma.hbm_to_vmem [thread:$0]  (!%p3646_p10), %s4387_s1, 512, %s3640_s9, [#allocation7], %s4372_s16, %s4372_s16, %s4373_s17  }
  0x3a   : > { %s4389_s3 = sld [smem:[#allocation22_spill]] }
  0x40   : > { %s3307_s15 = scalar_lea.hbm %s4389_s3, 9216 }
  0x41   : > { %p3308_p1 = scmp.ne.s32.totalorder %s4389_s3, %s3307_s15  ;;  %p3314_p0 = scmp.lt.u32.totalorder %s3307_s15, %s4389_s3 }
  0x43   : > { %p3310_p4 = pnand %p3308_p1, %p3662_p12 }
  0x45   : > { %p3311_p6 = pneg %p3310_p4 }
  0x47   : > { %p3316_p3 = pnand %p3314_p0, %p3311_p6 }
  0x49   : > { %3319 = shalt.err (!%p3316_p3)
}
  0x4a   : > { %s3320_s9 = scalar_lea.vmem %s3650_s12, 9216  ;;  %p3328_p11 = scmp.lt.s32.totalorder %s3650_s12, %s3650_s12 }
  0x4b   : > { %p3321_p5 = scmp.ne.s32.totalorder %s3650_s12, %s3320_s9  ;;  %p3329_p13 = scmp.lt.s32.totalorder %s3320_s9, %s3320_s9 }
  0x4d   : > { %p3323_p7 = pnand %p3321_p5, %p3662_p12  ;;  %p3330_p1 = por %p3329_p13, %p3328_p11 }
  0x4f   : > { %p3324_p9 = pneg %p3323_p7 }
  0x51   : > { %p3331_p4 = pnand %p3330_p1, %p3324_p9 }
  0x53   : > { %3334 = shalt.err (!%p3331_p4)
}
  0x54   : > { %3090 = dma.hbm_to_vmem [thread:$0]  (!%p3646_p10), %s4389_s3, 9216, %s3650_s12, [#allocation10], %s4372_s16, %s4372_s16, %s4373_s17  }
  0x55   : > { %s4390_s2 = sld [smem:[#allocation21_spill]] }
  0x5b   : > { %s3335_s26 = scalar_lea.hbm %s4390_s2, 16 }
  0x5c   : > { %p3336_p6 = scmp.ne.s32.totalorder %s4390_s2, %s3335_s26  ;;  %p3342_p5 = scmp.lt.u32.totalorder %s3335_s26, %s4390_s2 }
  0x5e   : > { %p3338_p0 = pnand %p3336_p6, %p3662_p12 }
  0x60   : > { %p3339_p3 = pneg %p3338_p0 }
  0x62   : > { %p3344_p7 = pnand %p3342_p5, %p3339_p3 }
  0x64   : > { %3347 = shalt.err (!%p3344_p7)
}
  0x65   : > { %s3348_s9 = scalar_lea.vmem %s207_s14, 16  ;;  %s3355_s12 = scalar_lea.vmem %s207_s14, 32 }
  0x66   : > { %p3349_p9 = scmp.ne.s32.totalorder %s207_s14, %s3348_s9  ;;  %p3356_p1 = scmp.lt.s32.totalorder %s207_s14, %s207_s14 }
  0x67   : > { %p3357_p4 = scmp.lt.s32.totalorder %s3355_s12, %s3348_s9 }
  0x68   : > { %p3351_p11 = pnand %p3349_p9, %p3662_p12 }
  0x69   : > { %p3358_p8 = por %p3357_p4, %p3356_p1 }
  0x6a   : > { %p3352_p13 = pneg %p3351_p11 }
  0x6c   : > { %p3359_p2 = pnand %p3358_p8, %p3352_p13 }
  0x6e   : > { %3362 = shalt.err (!%p3359_p2)
}
  0x6f   : > { %3087 = dma.hbm_to_vmem [thread:$0]  (!%p3646_p10), %s4390_s2, 16, %s207_s14, [#allocation7]  }
  0x70   : > { %s3534_s22 = smov [#allocation11]   ;;  %s3363_s11 = scalar_lea.hbm %s4363_s4, 16 }
  0x71   : > { %s230_s6 = sshll.u32 %s3534_s22, 4  ;;  %p3364_p6 = scmp.ne.s32.totalorder %s4363_s4, %s3363_s11  ;;  %s231_s6 = int_to_ptr.vmem [resolvable:$true] %s230_s6 }
  0x72   : > { %p3370_p0 = scmp.lt.u32.totalorder %s3363_s11, %s4363_s4 }
  0x73   : > { %p3366_p2 = pnand %p3364_p6, %p3662_p12 }
  0x75   : > { %p3367_p8 = pneg %p3366_p2 }
  0x77   : > { %p3372_p3 = pnand %p3370_p0, %p3367_p8 }
  0x79   : > { %3375 = shalt.err (!%p3372_p3)
}
  0x7a   : > { %s3376_s14 = scalar_lea.vmem %s231_s6, 16  ;;  %s3383_s5 = scalar_lea.vmem %s231_s6, 32 }
  0x7b   : > { %p3377_p5 = scmp.ne.s32.totalorder %s231_s6, %s3376_s14  ;;  %p3384_p11 = scmp.lt.s32.totalorder %s231_s6, %s231_s6 }
  0x7c   : > { %p3385_p13 = scmp.lt.s32.totalorder %s3383_s5, %s3376_s14 }
  0x7d   : > { %p3379_p7 = pnand %p3377_p5, %p3662_p12 }
  0x7e   : > { %p3386_p1 = por %p3385_p13, %p3384_p11 }
  0x7f   : > { %p3380_p9 = pneg %p3379_p7 }
  0x81   : > { %p3387_p4 = pnand %p3386_p1, %p3380_p9 }
  0x83   : > { %3390 = shalt.err (!%p3387_p4)
}
  0x84   : > { %3093 = dma.hbm_to_vmem [thread:$0]  (!%p3646_p10), %s4363_s4, 16, %s231_s6, [#allocation10]  }
  0x85   : > { %s32_s8 = sadd.s32 1, %s3519_s23  ;;  %s35_s26 = sadd.s32 1, %s3523_s24 }
  0x86   : > { %p33_p12 = scmp.ge.s32.totalorder %s32_s8, 2  ;;  %s44_s10 = sadd.s32 1, %s3507_s20 }
  0x87   : > { %p51_p6 = scmp.ne.s32.totalorder %s3507_s20, %s3503_s19  ;;  %p52_p2 = scmp.eq.s32.totalorder %s3527_s25, 0 }
  0x88   : > { %s4435_s8 = smov (%p33_p12, %s32_s8), 0  ;;  %s4437_s26 = smov (!%p33_p12, %s35_s26), %s3523_s24 }
  0x89   : > { %s40_s27 = ssub.s32 %s3519_s23, %s4435_s8  ;;  %p3760_p8 = por %p52_p2, %p51_p6 }
  0x8a   : > { %p37_p10 = scmp.ge.s32.totalorder %s4437_s26, 2  ;;  %p4392_p0 = scmp.ne.s32.totalorder %s4381_s29, 0 }
  0x8b   : > { %p3106_p5 = scmp.lt.s32.totalorder %s3527_s25, 4  ;;  %s241_s13 = sand.u32 1, %s3507_s20  }
  0x8c   : > { %p3766_p3 = por %p4392_p0, %p51_p6  ;;  %s4439_s26 = smov (%p37_p10, %s4437_s26), 0 }
  0x8d   : > { %s3057_s15 = smul.u32 36, %s241_s13  ;;  %s39_s9 = ssub.s32 %s3523_s24, %s4439_s26 }
  0x8e   : > { %s3058_s12 = smul.u32 9, %s3519_s23  ;;  %s41_s14 = sor.u32 %s40_s27, %s39_s9 }
  0x8f   : > { %p42_p7 = scmp.eq.s32.totalorder %s41_s14, 0  ;;  %s3059_s5 = smul.u32 18, %s3523_s24 }
  0x90   : > { %s245_s18 = scalar_lea.vmem [#allocation3], %s3057_s15  ;;  %p3780_p9 = pnand %p3106_p5, %p3760_p8 }
  0x91   : > { %s254_s22 = sshll.u32 %s245_s18, 4  ;;  %s251_s17 = sadd.s32 %s3059_s5, %s3058_s12  ;;  %s3787_s22 = int_to_ptr.vmem [resolvable:$true] %s254_s22 }
  0x92   : > { %s3785_s16 = scalar_select %p42_p7, %s3507_s20, %s44_s10  }
  0x93   : > { %s2499_s1 = sshll.u32 %s251_s17, 6  ;;  %s3794_s11 = scalar_lea.sflag [#allocation4], %s241_s13 }
  0x94   : > { %s3792_s27 = scalar_lea.hbm %s4359_s0, %s2499_s1  ;;  %p3393_p13 = pneg %p3780_p9 }
  0x95   : > { %s3391_s15 = scalar_lea.hbm %s3792_s27, 576  ;;  %s3396_s2 = scalar_lea.hbm %s4359_s0, 2304 }
  0x96   : > { %p3392_p11 = scmp.ne.s32.totalorder %s3792_s27, %s3391_s15  ;;  %p3397_p12 = scmp.lt.u32.totalorder %s3792_s27, %s4359_s0 }
  0x97   : > { %p3398_p6 = scmp.lt.u32.totalorder %s3396_s2, %s3391_s15  ;;  %p3400_p8 = scmp.lt.u32.totalorder %s3391_s15, %s3792_s27 }
  0x98   : > { %p3394_p1 = pnand %p3393_p13, %p3392_p11 }
  0x99   : > { %p3399_p2 = por %p3398_p6, %p3397_p12 }
  0x9a   : > { %p3395_p4 = pneg %p3394_p1 }
  0x9b   : > { %p3401_p10 = por %p3400_p8, %p3399_p2 }
  0x9d   : > { %p3402_p0 = pnand %p3401_p10, %p3395_p4 }
  0x9f   : > { %3405 = shalt.err (!%p3402_p0)
}
  0xa0   : > { %s3406_s13 = scalar_lea.vmem %s3787_s22, 576  ;;  %s3535_s9 = smov [#allocation3]  }
  0xa1   : > { %p3407_p5 = scmp.ne.s32.totalorder %s3787_s22, %s3406_s13  ;;  %s3411_s12 = sshll.u32 %s3535_s9, 4  ;;  %s3412_s12 = int_to_ptr.vmem [resolvable:$false] %s3411_s12 }
  0xa2   : > { %s3413_s14 = scalar_lea.vmem %s3412_s12, 1152  ;;  %p3414_p1 = scmp.lt.s32.totalorder %s3787_s22, %s3412_s12 }
  0xa3   : > { %p3409_p7 = pnand %p3407_p5, %p3393_p13  ;;  %p3415_p12 = scmp.lt.s32.totalorder %s3413_s14, %s3406_s13 }
  0xa5   : > { %p3410_p11 = pneg %p3409_p7  ;;  %p3416_p6 = por %p3415_p12, %p3414_p1 }
  0xa7   : > { %p3417_p2 = pnand %p3416_p6, %p3410_p11 }
  0xa9   : > { %3420 = shalt.err (!%p3417_p2)
}
  0xaa   : > { %s4395_s5 = smov 4   ;;  %s4396_s18 = smov 64  }
  0xab   : > { %3097 = dma.hbm_to_vmem [thread:$0]  (!%p3780_p9), %s3792_s27, 576, %s3787_s22, %s3794_s11, %s4396_s18, %s4396_s18, %s4395_s5  }
  0xac   : > { %p4397_p13 = scmp.ne.s32.totalorder %s4385_s7, 0 }
  0xad   : > { %s3828_s15 = sand.u32 (!%p4397_p13), 1, %s3503_s19   ;;  %p4398_p4 = scmp.ne.s32.totalorder (!%p4397_p13), %s4382_s30, 0 }
  0xae   : > { %266 = sbr.rel (%p4397_p13) target bundleno = 842 (0x34a), region = 40  ;;  %s269_s10 = scalar_lea.sflag (!%p4397_p13), [#allocation4], %s3828_s15 }
  0xaf   : > { %s3060_s17 = smul.u32 (!%p4397_p13), 36, %s3828_s15 }
  0xb1   : > { %s3832_s2 = scalar_lea.vmem (!%p4397_p13), [#allocation3], %s3060_s17 }
  0xb5   : > { %3482 = dma.done.wait (%p4398_p4), %s269_s10, 576  }
  0xb6   : > { %3484 = vsyncadd (%p4398_p4), %s269_s10, 4294966720  ;;  %p4399_p9 = scmp.ne.s32.totalorder %s4380_s28, 0 }
  0xb8   : > { %3486 = dma.done.wait (%p4399_p9), [#allocation7], 528  }
  0xb9   : > { %3488 = vsyncadd (%p4399_p9), [#allocation7], 4294966768 }
  0xba   : > { %3490 = dma.done.wait (%p4399_p9), [#allocation10], 9232  }
  0xbb   : > { %3492 = vsyncadd (%p4399_p9), [#allocation10], 4294958064  ;;  %v3187_v0 = vld [vmem:[#allocation6] sm:$0xff]   ;;  %vm386_vm0 = vcmask 130048   ;;  %v3189_v2 = vld [vmem:[#allocation6 + $0x8] sm:$0xff]   ;;  %vm700_vm2 = vcmask 1046528  }
  0xbc   : > { %v3188_v1 = vld [vmem:[%s3832_s2] sm:$0xff]   ;;  %2763 = vmatprep.subr.bf16.mxu0 %v3187_v0  ;;  %v3190_v3 = vld [vmem:[%s3832_s2 + $0x8] sm:$0xff]   ;;  %2753 = vmatprep.subr.bf16.mxu1 %v3189_v2  ;;  %v3191_v5 = vld [vmem:[#allocation6 + $0x10] sm:$0xff]   ;;  %vm348_vm1 = vsmask.f32 7424  ;;  %v3536_v63 = vmov 0.0  }
  0xbd   : > { %2764 = vmatpush3.bf16.msra.mxu0 %v3187_v0  ;;  %2765 = vmatprep.mubr.msk.bf16.mxu0 %vm386_vm0, %v3188_v1  ;;  %v350_v4 = vshrl.u32 %v3188_v1, 16  ;;  %v352_v6 = vshll.u32 %v3188_v1, 16  ;;  %v357_v7 = vshll.u32 %v3190_v3, 16  ;;  %v361_v8 = vshrl.u32 %v3190_v3, 16  ;;  %v3192_v10 = vld [vmem:[%s3832_s2 + $0x10] sm:$0xff]   ;;  %v3198_v34 = vld [vmem:[#allocation6 + $0x18] sm:$0xff]  }
  0xbe   : > { %2754 = vmatpush3.bf16.msra.mxu1 %v3189_v2  ;;  %2773 = vmatprep.subr.bf16.mxu0 %v3191_v5  ;;  %v3194_v12 = vld [vmem:[%s3832_s2 + $0x18] ss:$0 sps:$4 sm:$0xff]   ;;  %v365_v14 = vshll.u32 %v3192_v10, 16  ;;  %v369_v16 = vshrl.u32 %v3192_v10, 16  ;;  %v545_v17 = vld [vmem:[%s3832_s2 + $0x4] sm:$0xf] }
  0xbf   : > { %v354_v9 = vrot.slane %v352_v6, 1  ;;  %v359_v11 = vrot.slane %v357_v7, 1  ;;  %v3193_v15 = vld [vmem:[%s3832_s2 + $0x18] ss:$0 sps:$4 sm:$0x77]   ;;  %v373_v20 = vshll.u32 %v3194_v12, 16  ;;  %2793 = vmatprep.subr.bf16.mxu1 %v3536_v63 }
  0xc0   : > { %2766 = vmatmul.mubr.msk.bf16.vlgmr.msra.gmra.mrb[0].mxu0 %vm386_vm0, %v3190_v3  ;;  %v546_v18 = vld [vmem:[%s3832_s2 + $0x8] sm:$0xf]  ;;  %v377_v21 = vshrl.u32 %v3194_v12, 16  ;;  %v367_v24 = vrot.slane %v365_v14, 1  ;;  %v3196_v25 = vld [vmem:[%s3832_s2 + $0xc] sm:$0xff]   ;;  %v3197_v29 = vld [vmem:[%s3832_s2 + $0x14] sm:$0xff]  }
  0xc1   : > { %2774 = vmatpush3.bf16.msra.mxu0 %v3191_v5  ;;  %v355_v13 = vor.u32 %v354_v9, %v350_v4  ;;  %2769 = vmatprep.mubr.msk.bf16.mxu0 %vm386_vm0, %v3192_v10  ;;  %v363_v19 = vor.u32 %v361_v8, %v359_v11  ;;  %v2521_v22 = vcombine.low %v545_v17, %v546_v18  ;;  %v375_v26 = vrot.slane %v373_v20, 1  ;;  %v3199_v37 = vld [vmem:[%s3832_s2 + $0x1c] ss:$0 sps:$4 sm:$0xff]   ;;  %v693_v41 = vld [vmem:[%s3832_s2 + $0x4] sm:$0xe]  ;;  %v3202_v0 = vld [vmem:[#allocation9 + $0x48] sm:$0xff]  }
  0xc2   : > { %v371_v31 = vor.u32 %v369_v16, %v367_v24  ;;  %v581_v32 = vshll.u32 %v3196_v25, 16  ;;  %v585_v33 = vshrl.u32 %v3196_v25, 16  ;;  %v589_v36 = vshll.u32 %v3197_v29, 16  ;;  %2783 = vmatprep.subr.bf16.mxu0 %v3198_v34  ;;  %v3201_v62 = vld [vmem:[#allocation9 + $0x40] sm:$0xff]   ;;  %v3204_v2 = vld [vmem:[#allocation9 + $0x50] sm:$0xff]   ;;  %v3205_v3 = vld [vmem:[#allocation9 + $0x88] sm:$0xff]  }
  0xc3   : > { %v360_v23 = vsel %vm348_vm1, %v355_v13, %v359_v11  ;;  %v574_v27 = vshrl.u32 %v2521_v22, 16  ;;  %v576_v28 = vshll.u32 %v2521_v22, 16  ;;  %v368_v30 = vsel %vm348_vm1, %v363_v19, %v367_v24  ;;  %v3203_v1 = vld [vmem:[#allocation9 + $0x80] sm:$0xff]   ;;  %v3206_v4 = vld [vmem:[#allocation9 + $0x58] sm:$0xff]   ;;  %v3207_v5 = vld [vmem:[#allocation9 + $0x90] sm:$0xff]   ;;  %s2537_s28 = sshll.u32 %s3511_s21, 2 }
  0xc4   : > { %2755 = vmatprep.mubr.msk.bf16.mxu1 %vm386_vm0, %v360_v23  ;;  %v376_v38 = vsel %vm348_vm1, %v371_v31, %v375_v26  ;;  %v583_v39 = vrot.slane %v581_v32, 1  ;;  %v593_v40 = vshrl.u32 %v3197_v29, 16  ;;  %v379_v42 = vor.u32 %v377_v21, %v375_v26  ;;  %v3208_v6 = vld [vmem:[#allocation9 + $0x60] sm:$0xff]   ;;  %v3209_v7 = vld [vmem:[#allocation9 + $0x98] sm:$0xff]   ;;  %v3210_v8 = vld [vmem:[#allocation9 + $0x68] sm:$0xff]   ;;  %s2538_s30 = sadd.s32 4294967295, %s2537_s28 }
  0xc5   : > { %2756 = vmatmul.mubr.msk.bf16.vlgmr.msra.gmra.mrb[0].mxu1 %vm386_vm0, %v368_v30  ;;  %v578_v35 = vrot.slane %v576_v28, 1  ;;  %v591_v44 = vrot.slane %v589_v36, 1  ;;  %v597_v45 = vshll.u32 %v3199_v37, 16  ;;  %v601_v47 = vshrl.u32 %v3199_v37, 16  ;;  %v3211_v9 = vld [vmem:[#allocation9 + $0xa0] sm:$0xff]   ;;  %v3212_v10 = vld [vmem:[#allocation9 + $0x70] sm:$0xff]   ;;  %s878_s7 = scvt.s32.f32 %s2538_s30 }
  0xc6   : > { %2759 = vmatprep.mubr.msk.bf16.mxu1 %vm386_vm0, %v376_v38  ;;  %v587_v46 = vor.u32 %v585_v33, %v583_v39  ;;  %v2530_v48 = vcombine.low %v693_v41, %v546_v18  ;;  %v702_v49 = vrot.slane %v3196_v25, 1  ;;  %v704_v53 = vrot.slane %v3197_v29, 1  ;;  %2794 = vmatpush3.bf16.msra.mxu1 %v3201_v62  ;;  %v3213_v11 = vld [vmem:[#allocation9 + $0xa8] sm:$0xff]   ;;  %v3214_v12 = vld [vmem:[#allocation9 + $0x78] sm:$0xff]   ;;  %v3215_v13 = vld [vmem:[#allocation9 + $0xb0] sm:$0xff]   ;;  %s2505_s22 = sshll.u32 %s3828_s15, 4 }
  0xc7   : > { %v579_v43 = vor.u32 %v578_v35, %v574_v27  ;;  %v595_v51 = vor.u32 %v593_v40, %v591_v44  ;;  %v599_v52 = vrot.slane %v597_v45, 1  ;;  %v706_v55 = vrot.slane %v3199_v37, 1  ;;  %2795 = vmatprep.subr.bf16.mxu1 %v3536_v63  ;;  %s4284_s29 = scalar_lea.vmem [#allocation12], %s2505_s22  ;;  %s4422_s27 = sld [smem:[#allocation18_spill]] }
  0xc8   : > { %2770 = vmatmul.mubr.msk.bf16.gmra.mrb[4].mxu0 %vm386_vm0, %v3193_v15  ;;  %v701_v54 = vrot.slane %v2530_v48, 1  ;;  %v592_v56 = vsel %vm348_vm1, %v587_v46, %v591_v44  ;;  %v705_v60 = vsel %vm700_vm2, %v702_v49, %v704_v53  ;;  %v3537_v14 = vmov 0   ;;  %v3217_v15 = vld [vmem:[#allocation9 + $0xb8] sm:$0xff]   ;;  %s2363_s13 = sshll.u32 %s4284_s29, 4  ;;  %s4423_s14 = sld [smem:[#allocation23_spill]]  ;;  %s4303_s13 = int_to_ptr.vmem [resolvable:$true] %s2363_s13 }
  0xc9   : > { %v584_v50 = vsel %vm348_vm1, %v579_v43, %v583_v39  ;;  %v600_v57 = vsel %vm348_vm1, %v595_v51, %v599_v52  ;;  %v603_v58 = vor.u32 %v601_v47, %v599_v52  ;;  %v707_v61 = vsel %vm700_vm2, %v704_v53, %v706_v55  ;;  %952 = vst [vmem:[#allocation2] sm:$0xff] %v3537_v14  ;;  %s2348_s5 = scalar_lea.sflag [#allocation5], %s3828_s15  ;;  %s3421_s18 = scalar_lea.vmem %s4303_s13, 256 }
  0xca   : > { %2775 = vmatprep.mubr.msk.bf16.mxu0 %vm386_vm0, %v584_v50  ;;  %v703_v59 = vsel %vm700_vm2, %v701_v54, %v702_v49  ;;  %2796 = vmatpush3.bf16.msra.mxu1 %v3202_v0  ;;  %vm3538_vm3 = vmmov 0   ;;  %v825_v16 = vlaneseq  ;;  %p3422_p8 = scmp.ne.s32.totalorder %s4303_s13, %s3421_s18  ;;  %s3539_s17 = smov [#allocation12]  }
  0xcb   : > { %2797 = vmatprep.subr.bf16.mxu1 %v3536_v63  ;;  %s3425_s10 = sshll.u32 %s3539_s17, 4  ;;  %s3426_s10 = int_to_ptr.vmem [resolvable:$false] %s3425_s10 }
  0xcc   : > { %v3904_v17 = vshrl.u32 %v825_v16, 7  ;;  %p3423_p10 = pnand %p3422_p8, %p3766_p3  ;;  %s3427_s2 = scalar_lea.vmem %s3426_s10, 512 }
  0xcd   : > { %2760 = vmatmul.mubr.msk.bf16.gmra.mrb[4].mxu1 %vm386_vm0, %v379_v42  ;;  %s2624_s11 = sshll.u32 %s4422_s27, 3  ;;  %p3428_p5 = scmp.lt.s32.totalorder %s4303_s13, %s3426_s10 }
  0xce   : > { %2798 = vmatpush3.bf16.msra.mxu1 %v3204_v2  ;;  %2809 = vmatprep.mubr.msk.bf16.mxu1 %vm3538_vm3, %v3536_v63  ;;  %v828_v18 = vadd.s32 16, %v3904_v17  ;;  %v3908_v20 = vadd.s32 24, %v3904_v17  ;;  %v3911_v21 = vadd.s32 8, %v3904_v17  ;;  %v833_v23 = vcvt.s32.f32 %v3904_v17  ;;  %s2360_s1 = sadd.s32 %s2624_s11, %s2537_s28  ;;  %p3424_p0 = pneg %p3423_p10 }
  0xcf   : > { %2799 = vmatprep.subr.bf16.mxu1 %v3536_v63  ;;  %v3922_v30 = vadd.s32 48, %v3904_v17  ;;  %v3930_v39 = vadd.s32 32, %v3904_v17  ;;  %v3935_v41 = vadd.s32 40, %v3904_v17  ;;  %s2625_s3 = sshll.u32 %s2360_s1, 6  ;;  %p3429_p7 = scmp.lt.s32.totalorder %s3427_s2, %s3421_s18 }
  0xd0   : > { %2776 = vmatmul.mubr.msk.bf16.vlgmr.msra.gmra.mrb[0].mxu0 %vm386_vm0, %v592_v56  ;;  %v835_v19 = vcvt.s32.f32 %v828_v18  ;;  %v836_v27 = vcvt.s32.f32 %v3908_v20  ;;  %v834_v33 = vcvt.s32.f32 %v3911_v21  ;;  %v840_v35 = vadd.f32 0.5, %v833_v23  ;;  %s4301_s21 = scalar_lea.hbm %s4423_s14, %s2625_s3 }
  0xd1   : > { %2784 = vmatpush3.bf16.msra.mxu0 %v3198_v34  ;;  %2779 = vmatprep.mubr.msk.bf16.mxu0 %vm386_vm0, %v600_v57  ;;  %v839_v38 = vcvt.s32.f32 %v3922_v30  ;;  %v837_v51 = vcvt.s32.f32 %v3930_v39  ;;  %v838_v54 = vcvt.s32.f32 %v3935_v41  ;;  %v3224_v39 = vld [vmem:[#allocation9 + $0x20] sm:$0xff]   ;;  %p3430_p11 = por %p3429_p7, %p3428_p5 }
  0xd2   : > { %2849 = vmatprep.subr.bf16.mxu0 %v3536_v63  ;;  %2800 = vmatpush3.bf16.msra.mxu1 %v3206_v4  ;;  %v842_v26 = vadd.f32 0.5, %v835_v19  ;;  %v843_v37 = vadd.f32 0.5, %v836_v27  ;;  %v841_v40 = vadd.f32 0.5, %v834_v33  ;;  %v848_v43 = vmul.f32 0.11111111, %v840_v35 }
  0xd3   : > { %2801 = vmatprep.subr.bf16.mxu1 %v3536_v63  ;;  %v846_v50 = vadd.f32 0.5, %v839_v38  ;;  %v845_v0 = vadd.f32 0.5, %v838_v54  ;;  %p3431_p1 = pnand %p3430_p11, %p3424_p0 }
  0xd4   : > { %v850_v36 = vmul.f32 0.11111111, %v842_v26  ;;  %v851_v47 = vmul.f32 0.11111111, %v843_v37  ;;  %v849_v53 = vmul.f32 0.11111111, %v841_v40  ;;  %v855_v56 = vfloor.f32 %v848_v43 }
  0xd6   : > { %2802 = vmatpush3.bf16.msra.mxu1 %v3208_v6  ;;  %v857_v46 = vfloor.f32 %v850_v36  ;;  %v856_v62 = vfloor.f32 %v849_v53 }
  0xd7   : > { %2803 = vmatprep.subr.bf16.mxu1 %v3536_v63 }
  0xd8   : > { %2780 = vmatmul.mubr.msk.bf16.gmra.mrb[8].mxu0 %vm386_vm0, %v603_v58  ;;  %v864_v57 = vmul.f32 9.0, %v857_v46  ;;  %v858_v58 = vfloor.f32 %v851_v47 }
  0xd9   : > { %2785 = vmatprep.mubr.msk.bf16.mxu0 %vm386_vm0, %v703_v59  ;;  %v3941_v59 = vstv %s878_s7 }
  0xda   : > { %2804 = vmatpush3.bf16.msra.mxu1 %v3210_v8  ;;  %v882_v4 = vadd.f32 %v3941_v59, %v857_v46  ;;  %v880_v16 = vadd.f32 %v3941_v59, %v855_v56  ;;  %v881_v26 = vadd.f32 %v3941_v59, %v856_v62 }
  0xdb   : > { %2805 = vmatprep.subr.bf16.mxu1 %v3536_v63 }
  0xdc   : > { %vm896_vm5 = vcmp.ge.f32.partialorder %v882_v4, 0.0  ;;  %vm910_vm7 = vcmp.lt.f32.partialorder %v882_v4, 8.0  ;;  %vm894_vm9 = vcmp.ge.f32.partialorder %v880_v16, 0.0  ;;  %vm908_vm10 = vcmp.lt.f32.partialorder %v880_v16, 8.0  ;;  %v3232_v16 = vld [vmem:[#allocation9 + $0xc0] sm:$0xff]  }
  0xdd   : > { %vm895_vm15 = vcmp.ge.f32.partialorder %v881_v26, 0.0 }
  0xde   : > { %2806 = vmatpush3.bf16.msra.mxu1 %v3212_v10 }
  0xdf   : > { %2807 = vmatprep.subr.bf16.mxu1 %v3536_v63 }
  0xe0   : > { %2786 = vmatmul.mubr.msk.bf16.vlgmr.msra.gmra.mrb[0].mxu0 %vm386_vm0, %v705_v60  ;;  %v854_v60 = vmul.f32 0.11111111, %v846_v50 }
  0xe1   : > { %2789 = vmatprep.mubr.msk.bf16.mxu0 %vm386_vm0, %v707_v61  ;;  %2850 = vmatpush3.bf16.msra.mxu0 %v3203_v1  ;;  %v844_v61 = vadd.f32 0.5, %v837_v51  ;;  %v862_v1 = vmul.f32 9.0, %v855_v56 }
  0xe2   : > { %2851 = vmatprep.subr.bf16.mxu0 %v3536_v63  ;;  %2808 = vmatpush3.bf16.msra.mxu1 %v3214_v12  ;;  %v861_v8 = vfloor.f32 %v854_v60  ;;  %v863_v12 = vmul.f32 9.0, %v856_v62 }
  0xe3   : > { %2821 = vmatprep.subr.bf16.mxu1 %v3536_v63 }
  0xe4   : > { %v868_v20 = vmul.f32 9.0, %v861_v8 }
  0xe5   : > { %2852 = vmatpush3.bf16.msra.mxu0 %v3205_v3  ;;  %v871_v3 = vsub.f32 %v835_v19, %v864_v57  ;;  %v883_v19 = vadd.f32 %v3941_v59, %v858_v58 }
  0xe6   : > { %2853 = vmatprep.subr.bf16.mxu0 %v3536_v63 }
  0xe7   : > { %vm889_vm4 = vcmp.lt.f32.partialorder %v871_v3, 8.0  ;;  %vm897_vm12 = vcmp.ge.f32.partialorder %v883_v19, 0.0 }
  0xe8   : > { %2790 = vmatmul.mubr.msk.bf16.gmra.mrb[12].mxu0 %vm386_vm0, %v706_v55  ;;  %vm903_vm6 = vmand %vm889_vm4, %vm896_vm5  ;;  %vm911_vm4 = vcmp.lt.f32.partialorder %v883_v19, 8.0  ;;  %vm909_vm5 = vcmp.lt.f32.partialorder %v881_v26, 8.0 }
  0xe9   : > { %2854 = vmatpush3.bf16.msra.mxu0 %v3207_v5  ;;  %2865 = vmatprep.mubr.msk.bf16.mxu0 %vm3538_vm3, %v3536_v63  ;;  %v865_v5 = vmul.f32 9.0, %v858_v58  ;;  %vm3963_vm13 = vmand %vm903_vm6, %vm910_vm7 }
  0xea   : > { %2855 = vmatprep.subr.bf16.mxu0 %v3536_v63 }
  0xeb   : > { %v872_v18 = vsub.f32 %v836_v27, %v865_v5 }
  0xed   : > { %2856 = vmatpush3.bf16.msra.mxu0 %v3209_v7  ;;  %vm890_vm11 = vcmp.lt.f32.partialorder %v872_v18, 8.0 }
  0xee   : > { %2857 = vmatprep.subr.bf16.mxu0 %v3536_v63  ;;  %vm3979_vm6 = vmand %vm890_vm11, %vm897_vm12 }
  0xef   : > { %vm4006_vm12 = vmand %vm3979_vm6, %vm911_vm4 }
  0xf1   : > { %2858 = vmatpush3.bf16.msra.mxu0 %v3211_v9  ;;  %v852_v9 = vmul.f32 0.11111111, %v844_v61 }
  0xf2   : > { %2859 = vmatprep.subr.bf16.mxu0 %v3536_v63 }
  0xf3   : > { %v859_v21 = vfloor.f32 %v852_v9 }
  0xf5   : > { %2860 = vmatpush3.bf16.msra.mxu0 %v3213_v11  ;;  %v866_v36 = vmul.f32 9.0, %v859_v21  ;;  %v884_v47 = vadd.f32 %v3941_v59, %v859_v21 }
  0xf6   : > { %2861 = vmatprep.subr.bf16.mxu0 %v3536_v63 }
  0xf7   : > { %vm898_vm4 = vcmp.ge.f32.partialorder %v884_v47, 0.0 }
  0xf9   : > { %2862 = vmatpush3.bf16.msra.mxu0 %v3215_v13  ;;  %v853_v13 = vmul.f32 0.11111111, %v845_v0 }
  0xfa   : > { %2863 = vmatprep.subr.bf16.mxu0 %v3536_v63 }
  0xfd   : > { %2864 = vmatpush3.bf16.msra.mxu0 %v3217_v15  ;;  %v869_v15 = vsub.f32 %v833_v23, %v862_v1  ;;  %v3957_v23 = vld [vmem:[#allocation8] ss:$0 sm:$0xff] }
  0xfe   : > { %2905 = vmatprep.subr.bf16.mxu0 %v3536_v63 }
  0xff   : > { %vm887_vm8 = vcmp.lt.f32.partialorder %v869_v15, 8.0 }
 0x100   : > { %vm3971_vm0 = vmand %vm887_vm8, %vm894_vm9 }
 0x101   : > { %vm3993_vm11 = vmand %vm3971_vm0, %vm908_vm10 }
 0x198   : > { %v3913_v22 = vpop.f32.mrb[0].mxu1 }
 0x199   : > { %v3916_v25 = vpop.f32.mrb[1].mxu1 }
 0x19a   : > { %v3919_v29 = vpop.f32.mrb[2].mxu1 }
 0x19b   : > { %v2771_v24 = vpop.f32.mrb[4].mxu0  ;;  %v3924_v32 = vpop.f32.mrb[3].mxu1 }
 0x19c   : > { %v531_v28 = vpop.f32.mrb[5].mxu0 }
 0x19d   : > { %v2772_v31 = vpop.f32.mrb[6].mxu0 }
 0x19e   : > { %v534_v34 = vpop.f32.mrb[7].mxu0 }
 0x1a0   : > { %v2761_v42 = vpop.f32.mrb[4].mxu1 }
 0x1a1   : > { %v540_v44 = vadd.f32 %v2771_v24, %v2761_v42  ;;  %v449_v45 = vpop.f32.mrb[5].mxu1  ;;  %v870_v24 = vsub.f32 %v834_v33, %v863_v12  ;;  %v875_v33 = vsub.f32 %v839_v38, %v868_v20 }
 0x1a2   : > { %v532_v48 = vadd.f32 %v531_v28, %v449_v45  ;;  %v2762_v49 = vpop.f32.mrb[6].mxu1  ;;  %v860_v28 = vfloor.f32 %v853_v13  ;;  %v3216_v13 = vld [vmem:[#allocation9] sm:$0xff]  }
 0x1a3   : > { %v452_v52 = vpop.f32.mrb[7].mxu1  ;;  %vm888_vm14 = vcmp.lt.f32.partialorder %v870_v24, 8.0  ;;  %vm893_vm9 = vcmp.lt.f32.partialorder %v875_v33, 8.0 }
 0x1a4   : > { %v535_v55 = vadd.f32 %v534_v34, %v452_v52  ;;  %v886_v34 = vadd.f32 %v3941_v59, %v861_v8  ;;  %v867_v43 = vmul.f32 9.0, %v860_v28  ;;  %vm902_vm8 = vmand %vm888_vm14, %vm895_vm15  ;;  %v3221_v52 = vld [vmem:[#allocation9 + $0x108] sm:$0xff]  }
 0x1a5   : > { %vm4011_vm10 = vmand %vm902_vm8, %vm909_vm5 }
 0x1a6   : > { %vm900_vm7 = vcmp.ge.f32.partialorder %v886_v34, 0.0  ;;  %v874_v53 = vsub.f32 %v838_v54, %v867_v43  ;;  %vm914_vm14 = vcmp.lt.f32.partialorder %v886_v34, 8.0 }
 0x1a7   : > { %vm4020_vm15 = vmand %vm893_vm9, %vm900_vm7  ;;  %vm912_vm9 = vcmp.lt.f32.partialorder %v884_v47, 8.0  ;;  %v3220_v47 = vld [vmem:[#allocation9 + $0x10] sm:$0xff]  }
 0x1a8   : > { %vm892_vm5 = vcmp.lt.f32.partialorder %v874_v53, 8.0  ;;  %vm4041_vm7 = vmand %vm4020_vm15, %vm914_vm14  ;;  %v3222_v53 = vld [vmem:[#allocation9 + $0x18] sm:$0xff]  }
 0x1ab   : > { %v2781_v2 = vpop.f32.mrb[8].mxu0 }
 0x1ac   : > { %v3948_v6 = vadd.f32 %v2781_v2, %v540_v44  ;;  %v672_v7 = vpop.f32.mrb[9].mxu0 }
 0x1ad   : > { %v3950_v10 = vadd.f32 %v672_v7, %v532_v48  ;;  %v2782_v11 = vpop.f32.mrb[10].mxu0 }
 0x1ae   : > { %v675_v14 = vpop.f32.mrb[11].mxu0 }
 0x1af   : > { %v3953_v17 = vadd.f32 %v675_v14, %v535_v55  ;;  %v885_v55 = vadd.f32 %v3941_v59, %v860_v28 }
 0x1b1   : > { %vm899_vm6 = vcmp.ge.f32.partialorder %v885_v55, 0.0  ;;  %vm913_vm15 = vcmp.lt.f32.partialorder %v885_v55, 8.0 }
 0x1b2   : > { %vm4059_vm14 = vmand %vm892_vm5, %vm899_vm6  ;;  %vm1098_vm5 = vsmask.f32 256 }
 0x1b3   : > { %v2787_v31 = vpop.f32.mrb[0].mxu0  ;;  %vm3276_vm6 = vmpackc.low %vm4006_vm12, %vm3963_vm13 }
 0x1b4   : > { %v3045_v27 = vadd.f32 %v2787_v31, %v3913_v22  ;;  %v760_v35 = vpop.f32.mrb[1].mxu0 }
 0x1b5   : > { %v3046_v40 = vadd.f32 %v760_v35, %v3916_v25  ;;  %v2788_v42 = vpop.f32.mrb[2].mxu0  ;;  %v3218_v35 = vld [vmem:[#allocation9 + $0x8] sm:$0xff]  }
 0x1b6   : > { %v806_v44 = vadd.f32 %v3045_v27, %v3957_v23  ;;  %v3047_v30 = vadd.f32 %v2788_v42, %v3919_v29  ;;  %v763_v38 = vpop.f32.mrb[3].mxu0  ;;  %v873_v29 = vsub.f32 %v837_v51, %v866_v36 }
 0x1b7   : > { %v804_v45 = vadd.f32 %v3046_v40, %v3957_v23  ;;  %v3048_v46 = vadd.f32 %v763_v38, %v3924_v32 }
 0x1b8   : > { %v813_v48 = vmul.f32 0.01, %v806_v44  ;;  %v807_v49 = vadd.f32 %v3047_v30, %v3957_v23  ;;  %vm891_vm0 = vcmp.lt.f32.partialorder %v873_v29, 8.0  ;;  %v3219_v30 = vld [vmem:[#allocation9 + $0x100] sm:$0xff]  }
 0x1b9   : > { %v811_v50 = vmul.f32 0.01, %v804_v45  ;;  %v805_v32 = vadd.f32 %v3048_v46, %v3957_v23  ;;  %vm4051_vm8 = vmand %vm891_vm0, %vm898_vm4 }
 0x1ba   : > { %v4001_v56 = vmax.f32 %v806_v44, %v813_v48  ;;  %v814_v57 = vmul.f32 0.01, %v807_v49  ;;  %vm3273_vm0 = vmpackc.low %vm4011_vm10, %vm3993_vm11 }
 0x1bb   : > { %v818_v51 = vmax.f32 %v804_v45, %v811_v50  ;;  %v812_v58 = vmul.f32 0.01, %v805_v32  ;;  %v2791_v41 = vpop.f32.mrb[12].mxu0  ;;  %vm4079_vm4 = vmand %vm4051_vm8, %vm912_vm9 }
 0x1bc   : > { %v4015_v54 = vmax.f32 %v807_v49, %v814_v57  ;;  %v796_v59 = vadd.f32 %v2791_v41, %v3948_v6  ;;  %v776_v62 = vpop.f32.mrb[13].mxu0  ;;  %v938_v3 = vsel %vm3963_vm13, %v4001_v56, 0.0  ;;  %v3223_v57 = vld [vmem:[#allocation9 + $0x110] sm:$0xff]   ;;  %vm1535_vm13 = vsmask.f32 3328 }
 0x1bd   : > { %v819_v0 = vmax.f32 %v805_v32, %v812_v58  ;;  %v794_v1 = vadd.f32 %v776_v62, %v3950_v10  ;;  %v2792_v2 = vpop.f32.mrb[14].mxu0  ;;  %v936_v4 = vsel %vm3993_vm11, %v818_v51, 0.0  ;;  %vm947_vm11 = vcmask 1042432  }
 0x1be   : > { %v939_v5 = vsel %vm4006_vm12, %v4015_v54, 0.0  ;;  %v810_v6 = vadd.f32 %v3957_v23, %v796_v59  ;;  %v779_v7 = vpop.f32.mrb[15].mxu0  ;;  %v3277_v50 = vpack.c.bf16 %v4015_v54, %v4001_v56  ;;  %v3225_v54 = vld [vmem:[#allocation9 + $0x118] sm:$0xff]   ;;  %v3226_v59 = vld [vmem:[#allocation9 + $0x28] sm:$0xff]   ;;  %v3228_v2 = vld [vmem:[#allocation9 + $0x30] sm:$0xff]   ;;  %vm1399_vm12 = vcmask 1043456  }
 0x1bf   : > { %v4034_v8 = vpack.c.bf16 %v939_v5, %v938_v3  ;;  %v937_v9 = vsel %vm4011_vm10, %v819_v0, 0.0  ;;  %v808_v11 = vadd.f32 %v3957_v23, %v794_v1  ;;  %v795_v12 = vadd.f32 %v779_v7, %v3953_v17  ;;  %vm920_vm10 = vmand %vm4059_vm14, %vm913_vm15  ;;  %v957_v1 = vld [vmem:[#allocation2] sm:$0x80]  ;;  %v3229_v5 = vld [vmem:[#allocation9 + $0x128] sm:$0xff]  }
 0x1c0   : > { %v4047_v14 = vpack.c.bf16 %v937_v9, %v936_v4  ;;  %v817_v15 = vmul.f32 0.01, %v810_v6  ;;  %v3274_v24 = vpack.c.bf16 %v819_v0, %v818_v51  ;;  %v3227_v0 = vld [vmem:[#allocation9 + $0x120] sm:$0xff]   ;;  %v1100_v3 = vshrl.u32 %v957_v1, 16  ;;  %v3230_v7 = vld [vmem:[#allocation9 + $0x38] sm:$0xff]  }
 0x1c1   : > { %954 = vst [vmem:[#allocation2 + $0x10] sm:$0xff] %v4034_v8  ;;  %v815_v18 = vmul.f32 0.01, %v808_v11  ;;  %v809_v19 = vadd.f32 %v3957_v23, %v795_v12  ;;  %v4064_v20 = vshll.u32 %v4034_v8, 16  ;;  %v4074_v31 = vshrl.u32 %v4034_v8, 16  ;;  %v3251_v1 = vld [vmem:[#allocation9 + $0x200] sm:$0xff]  }
 0x1c2   : > { %953 = vst [vmem:[#allocation2 + $0x8] sm:$0xff] %v4047_v14  ;;  %v824_v21 = vmax.f32 %v810_v6, %v817_v15  ;;  %3275 = vmatmul.mubr.msk.bf16.vlgmr.msra.gmra.mrb[8].mxu1 %vm3273_vm0, %v3274_v24  ;;  %v1104_v26 = vshrl.u32 %v4047_v14, 16  ;;  %v1107_v28 = vshll.u32 %v4047_v14, 16  ;;  %v3231_v15 = vld [vmem:[#allocation9 + $0x130] sm:$0xff]   ;;  %vm2323_vm14 = vsmask.f32 2304 }
 0x1c3   : > { %v822_v23 = vmax.f32 %v808_v11, %v815_v18  ;;  %v816_v27 = vmul.f32 0.01, %v809_v19  ;;  %2822 = vmatpush3.bf16.msra.mxu1 %v3216_v13  ;;  %2813 = vmatprep.mubr.msk.bf16.mxu1 %vm3538_vm3, %v3536_v63  ;;  %v1254_v22 = vrot.slane %v4064_v20, 1  ;;  %v1114_v38 = vrot.slane %v4074_v31, 7 }
 0x1c4   : > { %v942_v33 = vsel %vm4041_vm7, %v824_v21, 0.0  ;;  %v1252_v36 = vrot.slane %v1107_v28, 1  ;;  %2823 = vmatprep.subr.bf16.mxu1 %v3536_v63  ;;  %v4093_v43 = vrot.slane %v1104_v26, 7  ;;  %v1102_v13 = vrot.slane %v1100_v3, 7  ;;  %v3233_v21 = vld [vmem:[#allocation9 + $0x138] sm:$0xff]  }
 0x1c5   : > { %v946_v40 = vpack.c.bf16 %v942_v33, %v942_v33  ;;  %v823_v42 = vmax.f32 %v809_v19, %v816_v27  ;;  %v940_v25 = vsel %vm4079_vm4, %v822_v23, 0.0  ;;  %v1117_v29 = vor.u32 %v4064_v20, %v1114_v38 }
 0x1c6   : > { %v1253_v44 = vor.u32 %v1252_v36, %v1104_v26  ;;  %v1256_v37 = vor.u32 %v1254_v22, %v4074_v31  ;;  %v1109_v11 = vor.u32 %v1107_v28, %v4093_v43  ;;  %v1544_v24 = vrot.slane %v4074_v31, 4  ;;  %v3234_v28 = vld [vmem:[#allocation9 + $0xc8] sm:$0xff]   ;;  %v3236_v36 = vld [vmem:[#allocation9 + $0xd0] sm:$0xff]  }
 0x1c7   : > { %v950_v45 = vsel %vm947_vm11, %v946_v40, 0  ;;  %v941_v46 = vsel %vm920_vm10, %v823_v42, 0.0  ;;  %2824 = vmatpush3.bf16.msra.mxu1 %v3218_v35  ;;  %v4116_v32 = vsel %vm1098_vm5, %v4093_v43, %v1117_v29  ;;  %v1545_v26 = vrot.slane %v4064_v20, 5  ;;  %v3235_v20 = vld [vmem:[#allocation9 + $0x180] sm:$0xff]   ;;  %v3244_v31 = vld [vmem:[#allocation9 + $0xf0] sm:$0xff]  }
 0x1c8   : > { %956 = vst [vmem:[#allocation2 + $0x20] sm:$0xff] %v950_v45  ;;  %v4100_v48 = vpack.c.bf16 %v941_v46, %v940_v25  ;;  %2825 = vmatprep.subr.bf16.mxu1 %v3536_v63  ;;  %v1255_v49 = vsel %vm348_vm1, %v1253_v44, %v1254_v22  ;;  %v1110_v17 = vsel %vm1098_vm5, %v1102_v13, %v1109_v11  ;;  %v3237_v22 = vld [vmem:[#allocation9 + $0x188] sm:$0xff]   ;;  %v3238_v45 = vld [vmem:[#allocation9 + $0xd8] sm:$0xff]   ;;  %v3256_v11 = vld [vmem:[#allocation9 + $0x160] sm:$0xff]   ;;  %vm2283_vm7 = vsmask.f32 7440 }
 0x1c9   : > { %2866 = vmatmul.mubr.bf16.vlgmr.msra.gmra.mrb[16].mxu0 %v1255_v49  ;;  %v4148_v4 = vld [vmem:[#allocation2 + $0x8] sm:$0xf0]  ;;  %v1546_v33 = vor.u32 %v1545_v26, %v1544_v24  ;;  %v3240_v49 = vld [vmem:[#allocation9 + $0xe0] sm:$0xff]   ;;  %vm2284_vm9 = vmor %vm1535_vm13, %vm2283_vm7  ;;  %vm2324_vm15 = vsmask.f32 6416 }
 0x1ca   : > { %955 = vst [vmem:[#allocation2 + $0x18] sm:$0xff] %v4100_v48  ;;  %2906 = vmatpush3.bf16.msra.mxu0 %v3219_v30  ;;  %3278 = vmatmul.mubr.msk.bf16.gmra.mrb[12].mxu1 %vm3276_vm6, %v3277_v50  ;;  %v1835_v55 = vshll.u32 %v4100_v48, 16  ;;  %v1537_v9 = vshrl.u32 %v4148_v4, 16  ;;  %v1540_v10 = vshll.u32 %v4148_v4, 16  ;;  %v3257_v13 = vld [vmem:[#allocation9 + $0x218] sm:$0xff]   ;;  %vm2325_vm0 = vmor %vm2323_vm14, %vm2324_vm15 }
 0x1cb   : > { %2826 = vmatpush3.bf16.msra.mxu1 %v3220_v47  ;;  %2907 = vmatprep.subr.bf16.mxu0 %v3536_v63  ;;  %v3239_v47 = vld [vmem:[#allocation9 + $0x190] sm:$0xff]   ;;  %v1669_v24 = vld [vmem:[#allocation2 + $0x8] sm:$0xe0] }
 0x1cc   : > { %2827 = vmatprep.subr.bf16.mxu1 %v3536_v63  ;;  %2869 = vmatprep.mubr.msk.bf16.mxu0 %vm3538_vm3, %v3536_v63  ;;  %v4128_v56 = vrot.slane %v1835_v55, 1  ;;  %v1539_v18 = vrot.slane %v1537_v9, 4  ;;  %v1542_v19 = vrot.slane %v1540_v10, 5  ;;  %v3255_v10 = vld [vmem:[#allocation9 + $0x210] sm:$0xff]   ;;  %v3262_v26 = vld [vmem:[#allocation9 + $0x178] sm:$0xff]  }
 0x1cd   : > { %2817 = vmatprep.mubr.msk.bf16.mxu1 %vm3538_vm3, %v3536_v63 }
 0x1ce   : > { %2908 = vmatpush3.bf16.msra.mxu0 %v3221_v52  ;;  %v4133_v51 = vsel %vm348_vm1, %v1256_v37, %v4128_v56  ;;  %v1543_v23 = vor.u32 %v1542_v19, %v1539_v18  ;;  %v3241_v52 = vld [vmem:[#allocation9 + $0x198] sm:$0xff]   ;;  %v3260_v19 = vld [vmem:[#allocation9 + $0x170] sm:$0xff]  }
 0x1cf   : > { %2828 = vmatpush3.bf16.msra.mxu1 %v3222_v53  ;;  %2909 = vmatprep.subr.bf16.mxu0 %v3536_v63  ;;  %v3243_v53 = vld [vmem:[#allocation9 + $0x1a0] sm:$0xff]  }
 0x1d0   : > { %2829 = vmatprep.subr.bf16.mxu1 %v3536_v63  ;;  %v1547_v40 = vsel %vm1535_vm13, %v1543_v23, %v1546_v33 }
 0x1d1   : > { %v1234_v58 = vld [vmem:[#allocation2 + $0x18] sm:$0x7] }
 0x1d2   : > { %v4136_v60 = vld [vmem:[#allocation2 + $0x18] sm:$0x3]  ;;  %v1258_v41 = vshll.u32 %v1234_v58, 16  ;;  %2910 = vmatpush3.bf16.msra.mxu0 %v3223_v57  ;;  %v1262_v6 = vshrl.u32 %v1234_v58, 16  ;;  %v1400_v57 = vrot.slane %v4148_v4, 4  ;;  %v1401_v58 = vrot.slane %v4034_v8, 4 }
 0x1d3   : > { %2818 = vmatmul.mubr.bf16.gmra.mrb[16].mxu1 %v4136_v60  ;;  %2911 = vmatprep.subr.bf16.mxu0 %v3536_v63  ;;  %v4162_v14 = vld [vmem:[#allocation2 + $0x18] sm:$0x7f]  ;;  %v1120_v35 = vshrl.u32 %v4136_v60, 16  ;;  %v1123_v30 = vshll.u32 %v4136_v60, 16 }
 0x1d4   : > { %2830 = vmatpush3.bf16.msra.mxu1 %v3224_v39  ;;  %v1260_v61 = vrot.slane %v1258_v41, 1  ;;  %2837 = vmatprep.mubr.msk.bf16.mxu1 %vm3538_vm3, %v3536_v63  ;;  %v1549_v34 = vshrl.u32 %v4162_v14, 16  ;;  %v1552_v27 = vshll.u32 %v4162_v14, 16  ;;  %v3247_v39 = vld [vmem:[#allocation9 + $0x1b0] sm:$0xff]   ;;  %v3248_v60 = vld [vmem:[#allocation9 + $0x140] sm:$0xff]   ;;  %v1402_v41 = vsel %vm1399_vm12, %v1400_v57, %v1401_v58  ;;  %v3272_v57 = vld [vmem:[#allocation9 + $0x1f8] sm:$0xff]  }
 0x1d5   : > { %2831 = vmatprep.subr.bf16.mxu1 %v3536_v63  ;;  %v1122_v44 = vrot.slane %v1120_v35, 7  ;;  %v1691_v35 = vrot.slane %v4034_v8, 5 }
 0x1d6   : > { %v1261_v62 = vsel %vm348_vm1, %v1256_v37, %v1260_v61  ;;  %2912 = vmatpush3.bf16.msra.mxu0 %v3225_v54  ;;  %v1264_v12 = vor.u32 %v1262_v6, %v1260_v61  ;;  %v1551_v42 = vrot.slane %v1549_v34, 4  ;;  %v1554_v43 = vrot.slane %v1552_v27, 5  ;;  %v3246_v37 = vld [vmem:[#allocation9 + $0xf8] sm:$0xff]   ;;  %v3250_v61 = vld [vmem:[#allocation9 + $0x148] sm:$0xff]   ;;  %v3263_v27 = vld [vmem:[#allocation9 + $0x230] sm:$0xff]  }
 0x1d7   : > { %2870 = vmatmul.mubr.bf16.gmra.mrb[20].mxu0 %v1261_v62  ;;  %2913 = vmatprep.subr.bf16.mxu0 %v3536_v63  ;;  %v1125_v46 = vor.u32 %v1123_v30, %v1122_v44  ;;  %v3249_v54 = vld [vmem:[#allocation9 + $0x1b8] sm:$0xff]   ;;  %v1690_v34 = vrot.slane %v1669_v24, 5  ;;  %v2100_v44 = vld [vmem:[#allocation2 + $0x20] sm:$0xf] }
 0x1d8   : > { %2832 = vmatpush3.bf16.msra.mxu1 %v3226_v59  ;;  %2873 = vmatprep.mubr.msk.bf16.mxu0 %vm3538_vm3, %v3536_v63  ;;  %v1555_v25 = vor.u32 %v1554_v43, %v1551_v42  ;;  %v1378_v59 = vld [vmem:[#allocation2 + $0x18] sm:$0x3f]  ;;  %v3254_v6 = vld [vmem:[#allocation9 + $0x158] sm:$0xff]   ;;  %v2128_v42 = vrot.slane %v1835_v55, 2  ;;  %v1693_v55 = vrot.slane %v4162_v14, 5 }
 0x1d9   : > { %2833 = vmatprep.subr.bf16.mxu1 %v3536_v63  ;;  %v1126_v50 = vsel %vm1098_vm5, %v1114_v38, %v1125_v46  ;;  %v3245_v38 = vld [vmem:[#allocation9 + $0x1a8] sm:$0xff]   ;;  %v1403_v62 = vrot.slane %v1378_v59, 4  ;;  %v1692_v43 = vsel %vm947_vm11, %v1690_v34, %v1691_v35  ;;  %v2135_v46 = vshll.u32 %v2100_v44, 16 }
 0x1da   : > { %2914 = vmatpush3.bf16.msra.mxu0 %v3227_v0  ;;  %v1556_v29 = vsel %vm1535_vm13, %v1546_v33, %v1555_v25  ;;  %v4211_v0 = vld [vmem:[#allocation2 + $0x20] sm:$0x7]  ;;  %v3264_v33 = vld [vmem:[#allocation9 + $0x1c0] sm:$0xff]  }
 0x1db   : > { %2915 = vmatprep.subr.bf16.mxu0 %v3536_v63  ;;  %v1843_v3 = vshll.u32 %v4211_v0, 16  ;;  %v1404_v4 = vsel %vm1399_vm12, %v1401_v58, %v1403_v62  ;;  %v3266_v30 = vld [vmem:[#allocation9 + $0x1c8] sm:$0xff]   ;;  %v1984_v58 = vrot.slane %v4100_v48, 1 }
 0x1dc   : > { %2834 = vmatpush3.bf16.msra.mxu1 %v3228_v2  ;;  %v3252_v2 = vld [vmem:[#allocation9 + $0x150] sm:$0xff]  }
 0x1dd   : > { %2835 = vmatprep.subr.bf16.mxu1 %v3536_v63  ;;  %v1845_v9 = vrot.slane %v1843_v3, 1 }
 0x1de   : > { %2916 = vmatpush3.bf16.msra.mxu0 %v3229_v5  ;;  %v3253_v5 = vld [vmem:[#allocation9 + $0x208] sm:$0xff]  }
 0x1df   : > { %2874 = vmatmul.mubr.bf16.gmra.mrb[24].mxu0 %v1264_v12  ;;  %2917 = vmatprep.subr.bf16.mxu0 %v3536_v63 }
 0x1e0   : > { %2836 = vmatpush3.bf16.msra.mxu1 %v3230_v7  ;;  %2921 = vmatprep.mubr.msk.bf16.mxu0 %vm3538_vm3, %v3536_v63  ;;  %v1839_v7 = vshrl.u32 %v4100_v48, 16 }
 0x1e1   : > { %2877 = vmatprep.subr.bf16.mxu1 %v3536_v63 }
 0x1e2   : > { %2918 = vmatpush3.bf16.msra.mxu0 %v3231_v15  ;;  %v3258_v15 = vld [vmem:[#allocation9 + $0x168] sm:$0xff]  }
 0x1e3   : > { %2838 = vmatmul.mubr.bf16.vlgmr.msra.gmra.mrb[20].mxu1 %v1110_v17  ;;  %2919 = vmatprep.subr.bf16.mxu0 %v3536_v63  ;;  %v4238_v17 = vld [vmem:[#allocation2 + $0x10] sm:$0xfe] }
 0x1e4   : > { %2878 = vmatpush3.bf16.msra.mxu1 %v3232_v16  ;;  %2841 = vmatprep.mubr.msk.bf16.mxu1 %vm3538_vm3, %v3536_v63  ;;  %v3259_v16 = vld [vmem:[#allocation9 + $0x220] sm:$0xff]   ;;  %v2123_v23 = vshll.u32 %v4238_v17, 16 }
 0x1e5   : > { %2879 = vmatprep.subr.bf16.mxu1 %v3536_v63 }
 0x1e6   : > { %2920 = vmatpush3.bf16.msra.mxu0 %v3233_v21  ;;  %v3261_v21 = vld [vmem:[#allocation9 + $0x228] sm:$0xff]  }
 0x1e7   : > { %2961 = vmatprep.subr.bf16.mxu0 %v3536_v63 }
 0x1e8   : > { %2880 = vmatpush3.bf16.msra.mxu1 %v3234_v28  ;;  %v2120_v28 = vshrl.u32 %v4238_v17, 16 }
 0x1e9   : > { %2881 = vmatprep.subr.bf16.mxu1 %v3536_v63  ;;  %2922 = vmatmul.mubr.bf16.vlgmr.msra.gmra.mrb[28].mxu0 %v1547_v40  ;;  %v2125_v40 = vrot.slane %v2123_v23, 2 }
 0x1ea   : > { %2962 = vmatpush3.bf16.msra.mxu0 %v3235_v20  ;;  %2925 = vmatprep.mubr.msk.bf16.mxu0 %vm3538_vm3, %v3536_v63  ;;  %v2127_v20 = vrot.slane %v1839_v7, 1 }
 0x1eb   : > { %2842 = vmatmul.mubr.bf16.gmra.mrb[24].mxu1 %v4116_v32  ;;  %2963 = vmatprep.subr.bf16.mxu0 %v3536_v63  ;;  %v3242_v32 = vld [vmem:[#allocation9 + $0xe8] sm:$0xff]  }
 0x1ec   : > { %2882 = vmatpush3.bf16.msra.mxu1 %v3236_v36  ;;  %2845 = vmatprep.mubr.msk.bf16.mxu1 %vm3538_vm3, %v3536_v63  ;;  %v2122_v36 = vrot.slane %v2120_v28, 1 }
 0x1ed   : > { %2883 = vmatprep.subr.bf16.mxu1 %v3536_v63 }
 0x1ee   : > { %2964 = vmatpush3.bf16.msra.mxu0 %v3237_v22  ;;  %v3265_v22 = vld [vmem:[#allocation9 + $0x238] sm:$0xff]   ;;  %v2126_v8 = vor.u32 %v2125_v40, %v2122_v36 }
 0x1ef   : > { %2965 = vmatprep.subr.bf16.mxu0 %v3536_v63 }
 0x1f0   : > { %2884 = vmatpush3.bf16.msra.mxu1 %v3238_v45  ;;  %v2129_v45 = vor.u32 %v2128_v42, %v2127_v20 }
 0x1f1   : > { %2885 = vmatprep.subr.bf16.mxu1 %v3536_v63  ;;  %2926 = vmatmul.mubr.bf16.gmra.mrb[32].mxu0 %v1556_v29 }
 0x1f2   : > { %2966 = vmatpush3.bf16.msra.mxu0 %v3239_v47  ;;  %2929 = vmatprep.mubr.msk.bf16.mxu0 %vm3538_vm3, %v3536_v63  ;;  %v3267_v47 = vld [vmem:[#allocation9 + $0x1d0] sm:$0xff]  }
 0x1f3   : > { %2846 = vmatmul.mubr.bf16.gmra.mrb[28].mxu1 %v1126_v50  ;;  %2967 = vmatprep.subr.bf16.mxu0 %v3536_v63  ;;  %v2137_v50 = vrot.slane %v2135_v46, 2 }
 0x1f4   : > { %2886 = vmatpush3.bf16.msra.mxu1 %v3240_v49  ;;  %2893 = vmatprep.mubr.msk.bf16.mxu1 %vm3538_vm3, %v3536_v63 }
 0x1f5   : > { %2887 = vmatprep.subr.bf16.mxu1 %v3536_v63 }
 0x1f6   : > { %2968 = vmatpush3.bf16.msra.mxu0 %v3241_v52  ;;  %v1694_v52 = vsel %vm947_vm11, %v1691_v35, %v1693_v55 }
 0x1f7   : > { %2969 = vmatprep.subr.bf16.mxu0 %v3536_v63 }
 0x1f8   : > { %2888 = vmatpush3.bf16.msra.mxu1 %v3242_v32  ;;  %v3268_v32 = vld [vmem:[#allocation9 + $0x1d8] sm:$0xff]  }
 0x1f9   : > { %2889 = vmatprep.subr.bf16.mxu1 %v3536_v63  ;;  %2930 = vmatmul.mubr.bf16.gmra.mrb[36].mxu0 %v1555_v25  ;;  %v2132_v25 = vshrl.u32 %v2100_v44, 16 }
 0x1fa   : > { %2970 = vmatpush3.bf16.msra.mxu0 %v3243_v53  ;;  %2977 = vmatprep.mubr.msk.bf16.mxu0 %vm3538_vm3, %v3536_v63  ;;  %v3269_v53 = vld [vmem:[#allocation9 + $0x1e0] sm:$0xff]  }
 0x1fb   : > { %2971 = vmatprep.subr.bf16.mxu0 %v3536_v63  ;;  %v2134_v29 = vrot.slane %v2132_v25, 1 }
 0x1fc   : > { %2890 = vmatpush3.bf16.msra.mxu1 %v3244_v31 }
 0x1fd   : > { %2891 = vmatprep.subr.bf16.mxu1 %v3536_v63  ;;  %v2138_v14 = vor.u32 %v2137_v50, %v2134_v29 }
 0x1fe   : > { %2972 = vmatpush3.bf16.msra.mxu0 %v3245_v38  ;;  %v3270_v38 = vld [vmem:[#allocation9 + $0x1e8] sm:$0xff]  }
 0x1ff   : > { %2973 = vmatprep.subr.bf16.mxu0 %v3536_v63 }
 0x200   : > { %2892 = vmatpush3.bf16.msra.mxu1 %v3246_v37  ;;  %v3271_v37 = vld [vmem:[#allocation9 + $0x1f0] sm:$0xff]  }
 0x201   : > { %2933 = vmatprep.subr.bf16.mxu1 %v3536_v63 }
 0x202   : > { %2974 = vmatpush3.bf16.msra.mxu0 %v3247_v39  ;;  %v1983_v39 = vrot.slane %v4238_v17, 1 }
 0x203   : > { %2894 = vmatmul.mubr.bf16.vlgmr.msra.gmra.mrb[32].mxu1 %v1402_v41  ;;  %2975 = vmatprep.subr.bf16.mxu0 %v3536_v63  ;;  %v1986_v41 = vrot.slane %v4211_v0, 1 }
 0x204   : > { %2934 = vmatpush3.bf16.msra.mxu1 %v3248_v60  ;;  %2897 = vmatprep.mubr.msk.bf16.mxu1 %vm3538_vm3, %v3536_v63  ;;  %v1985_v60 = vsel %vm700_vm2, %v1983_v39, %v1984_v58 }
 0x205   : > { %2935 = vmatprep.subr.bf16.mxu1 %v3536_v63 }
 0x206   : > { %2976 = vmatpush3.bf16.msra.mxu0 %v3249_v54  ;;  %v1987_v54 = vsel %vm700_vm2, %v1984_v58, %v1986_v41  ;;  %vm2275_vm2 = vcmask 60416  }
 0x207   : > { %3017 = vmatprep.subr.bf16.mxu0 %v3536_v63 }
 0x208   : > { %2936 = vmatpush3.bf16.msra.mxu1 %v3250_v61 }
 0x209   : > { %2937 = vmatprep.subr.bf16.mxu1 %v3536_v63  ;;  %2978 = vmatmul.mubr.bf16.vlgmr.msra.gmra.mrb[40].mxu0 %v4133_v51  ;;  %v1841_v51 = vor.u32 %v1839_v7, %v4128_v56  ;;  %v1847_v56 = vshrl.u32 %v4211_v0, 16 }
 0x20a   : > { %3018 = vmatpush3.bf16.msra.mxu0 %v3251_v1  ;;  %2981 = vmatprep.mubr.msk.bf16.mxu0 %vm3538_vm3, %v3536_v63 }
 0x20b   : > { %2898 = vmatmul.mubr.bf16.gmra.mrb[36].mxu1 %v1404_v4  ;;  %3019 = vmatprep.subr.bf16.mxu0 %v3536_v63  ;;  %v1846_v12 = vsel %vm348_vm1, %v1841_v51, %v1845_v9  ;;  %v1849_v18 = vor.u32 %v1847_v56, %v1845_v9  ;;  %vm2118_vm1 = vsmask.f32 6400 }
 0x20c   : > { %2938 = vmatpush3.bf16.msra.mxu1 %v3252_v2  ;;  %2901 = vmatprep.mubr.msk.bf16.mxu1 %vm3538_vm3, %v3536_v63  ;;  %v2130_v49 = vsel %vm2118_vm1, %v2126_v8, %v2129_v45  ;;  %v2139_v31 = vsel %vm2118_vm1, %v2129_v45, %v2138_v14 }
 0x20d   : > { %2939 = vmatprep.subr.bf16.mxu1 %v3536_v63 }
 0x20e   : > { %3020 = vmatpush3.bf16.msra.mxu0 %v3253_v5 }
 0x20f   : > { %3021 = vmatprep.subr.bf16.mxu0 %v3536_v63 }
 0x210   : > { %2940 = vmatpush3.bf16.msra.mxu1 %v3254_v6 }
 0x211   : > { %2941 = vmatprep.subr.bf16.mxu1 %v3536_v63  ;;  %2982 = vmatmul.mubr.bf16.gmra.mrb[44].mxu0 %v1846_v12 }
 0x212   : > { %3022 = vmatpush3.bf16.msra.mxu0 %v3255_v10  ;;  %2985 = vmatprep.mubr.msk.bf16.mxu0 %vm3538_vm3, %v3536_v63 }
 0x213   : > { %2902 = vmatmul.mubr.bf16.gmra.mrb[40].mxu1 %v1403_v62  ;;  %3023 = vmatprep.subr.bf16.mxu0 %v3536_v63 }
 0x214   : > { %2942 = vmatpush3.bf16.msra.mxu1 %v3256_v11  ;;  %2949 = vmatprep.mubr.msk.bf16.mxu1 %vm3538_vm3, %v3536_v63 }
 0x215   : > { %2943 = vmatprep.subr.bf16.mxu1 %v3536_v63 }
 0x216   : > { %3024 = vmatpush3.bf16.msra.mxu0 %v3257_v13 }
 0x217   : > { %3025 = vmatprep.subr.bf16.mxu0 %v3536_v63 }
 0x218   : > { %2944 = vmatpush3.bf16.msra.mxu1 %v3258_v15 }
 0x219   : > { %2945 = vmatprep.subr.bf16.mxu1 %v3536_v63  ;;  %2986 = vmatmul.mubr.bf16.gmra.mrb[48].mxu0 %v1849_v18 }
 0x21a   : > { %3026 = vmatpush3.bf16.msra.mxu0 %v3259_v16  ;;  %3033 = vmatprep.mubr.msk.bf16.mxu0 %vm3538_vm3, %v3536_v63 }
 0x21b   : > { %3027 = vmatprep.subr.bf16.mxu0 %v3536_v63 }
 0x21c   : > { %2946 = vmatpush3.bf16.msra.mxu1 %v3260_v19 }
 0x21d   : > { %2947 = vmatprep.subr.bf16.mxu1 %v3536_v63 }
 0x21e   : > { %3028 = vmatpush3.bf16.msra.mxu0 %v3261_v21 }
 0x21f   : > { %3029 = vmatprep.subr.bf16.mxu0 %v3536_v63 }
 0x220   : > { %2948 = vmatpush3.bf16.msra.mxu1 %v3262_v26 }
 0x221   : > { %2989 = vmatprep.subr.bf16.mxu1 %v3536_v63 }
 0x222   : > { %3030 = vmatpush3.bf16.msra.mxu0 %v3263_v27 }
 0x223   : > { %2950 = vmatmul.mubr.bf16.vlgmr.msra.gmra.mrb[44].mxu1 %v1692_v43  ;;  %3031 = vmatprep.subr.bf16.mxu0 %v3536_v63 }
 0x224   : > { %2990 = vmatpush3.bf16.msra.mxu1 %v3264_v33  ;;  %2953 = vmatprep.mubr.msk.bf16.mxu1 %vm3538_vm3, %v3536_v63 }
 0x225   : > { %2991 = vmatprep.subr.bf16.mxu1 %v3536_v63 }
 0x226   : > { %3032 = vmatpush3.bf16.msra.mxu0 %v3265_v22 }
 0x228   : > { %2992 = vmatpush3.bf16.msra.mxu1 %v3266_v30 }
 0x229   : > { %2993 = vmatprep.subr.bf16.mxu1 %v3536_v63  ;;  %3034 = vmatmul.mubr.bf16.vlgmr.msra.gmra.mrb[52].mxu0 %v2130_v49 }
 0x22a   : > { %3037 = vmatprep.mubr.msk.bf16.mxu0 %vm3538_vm3, %v3536_v63 }
 0x22b   : > { %2954 = vmatmul.mubr.bf16.gmra.mrb[48].mxu1 %v1694_v52 }
 0x22c   : > { %2994 = vmatpush3.bf16.msra.mxu1 %v3267_v47  ;;  %2957 = vmatprep.mubr.msk.bf16.mxu1 %vm3538_vm3, %v3536_v63 }
 0x22d   : > { %2995 = vmatprep.subr.bf16.mxu1 %v3536_v63 }
 0x230   : > { %2996 = vmatpush3.bf16.msra.mxu1 %v3268_v32 }
 0x231   : > { %2997 = vmatprep.subr.bf16.mxu1 %v3536_v63  ;;  %3038 = vmatmul.mubr.bf16.gmra.mrb[56].mxu0 %v2139_v31 }
 0x232   : > { %3041 = vmatprep.mubr.msk.bf16.mxu0 %vm3538_vm3, %v3536_v63 }
 0x233   : > { %2958 = vmatmul.mubr.bf16.gmra.mrb[52].mxu1 %v1693_v55 }
 0x234   : > { %2998 = vmatpush3.bf16.msra.mxu1 %v3269_v53  ;;  %3005 = vmatprep.mubr.msk.bf16.mxu1 %vm3538_vm3, %v3536_v63 }
 0x235   : > { %2999 = vmatprep.subr.bf16.mxu1 %v3536_v63 }
 0x238   : > { %3000 = vmatpush3.bf16.msra.mxu1 %v3270_v38 }
 0x239   : > { %3001 = vmatprep.subr.bf16.mxu1 %v3536_v63  ;;  %3042 = vmatmul.mubr.bf16.gmra.mrb[60].mxu0 %v2138_v14 }
 0x23c   : > { %3002 = vmatpush3.bf16.msra.mxu1 %v3271_v37 }
 0x23d   : > { %3003 = vmatprep.subr.bf16.mxu1 %v3536_v63 }
 0x240   : > { %3004 = vmatpush3.bf16.msra.mxu1 %v3272_v57 }
 0x243   : > { %3006 = vmatmul.mubr.bf16.vlgmr.msra.gmra.mrb[56].mxu1 %v1985_v60 }
 0x244   : > { %3009 = vmatprep.mubr.msk.bf16.mxu1 %vm3538_vm3, %v3536_v63 }
 0x24b   : > { %3010 = vmatmul.mubr.bf16.gmra.mrb[60].mxu1 %v1987_v54 }
 0x24c   : > { %3013 = vmatprep.mubr.msk.bf16.mxu1 %vm3538_vm3, %v3536_v63  ;;  %vm2308_vm3 = vcmask 1046532  }
 0x24d   : > { %vm2309_vm8 = vmor %vm947_vm11, %vm2308_vm3 }
 0x253   : > { %3014 = vmatmul.mubr.bf16.gmra.mrb[64].mxu1 %v1986_v41 }
 0x295   : > { %v1076_v59 = vpop.f32.mrb[8].mxu1 }
 0x296   : > { %v2811_v61 = vpop.f32.mrb[9].mxu1 }
 0x297   : > { %v1079_v62 = vpop.f32.mrb[10].mxu1 }
 0x298   : > { %v2812_v48 = vpop.f32.mrb[11].mxu1 }
 0x29c   : > { %v1350_v1 = vpop.f32.mrb[16].mxu0 }
 0x29d   : > { %v1084_v2 = vpop.f32.mrb[12].mxu1  ;;  %v2867_v3 = vpop.f32.mrb[17].mxu0 }
 0x29e   : > { %v2815_v4 = vpop.f32.mrb[13].mxu1  ;;  %v1353_v5 = vpop.f32.mrb[18].mxu0 }
 0x29f   : > { %v1087_v6 = vpop.f32.mrb[14].mxu1  ;;  %v2868_v7 = vpop.f32.mrb[19].mxu0 }
 0x2a0   : > { %v2816_v9 = vpop.f32.mrb[15].mxu1 }
 0x2a6   : > { %v1092_v0 = vpop.f32.mrb[16].mxu1 }
 0x2a7   : > { %v2819_v51 = vpop.f32.mrb[17].mxu1 }
 0x2a8   : > { %v1095_v10 = vpop.f32.mrb[18].mxu1 }
 0x2a9   : > { %v2820_v11 = vpop.f32.mrb[19].mxu1 }
 0x2aa   : > { %v1358_v12 = vpop.f32.mrb[20].mxu0 }
 0x2ab   : > { %v2871_v13 = vpop.f32.mrb[21].mxu0 }
 0x2ac   : > { %v1361_v63 = vpop.f32.mrb[22].mxu0 }
 0x2ad   : > { %v2872_v15 = vpop.f32.mrb[23].mxu0 }
 0x2b2   : > { %v1366_v56 = vpop.f32.mrb[24].mxu0 }
 0x2b3   : > { %v2875_v16 = vpop.f32.mrb[25].mxu0 }
 0x2b4   : > { %v1369_v18 = vpop.f32.mrb[26].mxu0 }
 0x2b5   : > { %v2876_v19 = vpop.f32.mrb[27].mxu0 }
 0x2b6   : > { %v1212_v17 = vpop.f32.mrb[20].mxu1 }
 0x2b7   : > { %v1213_v21 = vadd.f32 %v1212_v17, %v1076_v59  ;;  %v2839_v24 = vpop.f32.mrb[21].mxu1 }
 0x2b8   : > { %v1215_v26 = vpop.f32.mrb[22].mxu1 }
 0x2b9   : > { %v1216_v28 = vadd.f32 %v1215_v26, %v1079_v62  ;;  %v2840_v23 = vpop.f32.mrb[23].mxu1  ;;  %v1372_v34 = vadd.f32 %v1350_v1, %v1213_v21 }
 0x2bb   : > { %v1373_v27 = vadd.f32 %v1353_v5, %v1216_v28 }
 0x2bc   : > { %v1642_v35 = vpop.f32.mrb[28].mxu0 }
 0x2bd   : > { %v2923_v20 = vpop.f32.mrb[29].mxu0 }
 0x2be   : > { %v1220_v33 = vpop.f32.mrb[24].mxu1  ;;  %v1645_v42 = vpop.f32.mrb[30].mxu0 }
 0x2bf   : > { %v1221_v36 = vadd.f32 %v1220_v33, %v1084_v2  ;;  %v2843_v40 = vpop.f32.mrb[25].mxu1  ;;  %v2924_v44 = vpop.f32.mrb[31].mxu0 }
 0x2c0   : > { %v1223_v43 = vpop.f32.mrb[26].mxu1 }
 0x2c1   : > { %v1224_v22 = vadd.f32 %v1223_v43, %v1087_v6  ;;  %v2844_v30 = vpop.f32.mrb[27].mxu1  ;;  %v1374_v8 = vadd.f32 %v1358_v12, %v1221_v36 }
 0x2c3   : > { %v1375_v45 = vadd.f32 %v1361_v63, %v1224_v22 }
 0x2c4   : > { %v1650_v25 = vpop.f32.mrb[32].mxu0 }
 0x2c5   : > { %v2927_v55 = vpop.f32.mrb[33].mxu0 }
 0x2c6   : > { %v1228_v46 = vpop.f32.mrb[28].mxu1  ;;  %v1653_v29 = vpop.f32.mrb[34].mxu0 }
 0x2c7   : > { %v1229_v47 = vadd.f32 %v1228_v46, %v1092_v0  ;;  %v2847_v49 = vpop.f32.mrb[29].mxu1  ;;  %v2928_v52 = vpop.f32.mrb[35].mxu0 }
 0x2c8   : > { %v1231_v50 = vpop.f32.mrb[30].mxu1 }
 0x2c9   : > { %v2848_v32 = vpop.f32.mrb[31].mxu1  ;;  %v1376_v14 = vadd.f32 %v1366_v56, %v1229_v47 }
 0x2cc   : > { %v1658_v53 = vpop.f32.mrb[36].mxu0 }
 0x2cd   : > { %v2931_v31 = vpop.f32.mrb[37].mxu0 }
 0x2ce   : > { %v1661_v38 = vpop.f32.mrb[38].mxu0 }
 0x2cf   : > { %v2932_v37 = vpop.f32.mrb[39].mxu0 }
 0x2d6   : > { %v1490_v57 = vpop.f32.mrb[32].mxu1 }
 0x2d7   : > { %v1512_v39 = vadd.f32 %v1490_v57, %v1372_v34  ;;  %v2895_v58 = vpop.f32.mrb[33].mxu1 }
 0x2d8   : > { %v1493_v60 = vpop.f32.mrb[34].mxu1 }
 0x2d9   : > { %v1513_v41 = vadd.f32 %v1493_v60, %v1373_v27  ;;  %v2896_v54 = vpop.f32.mrb[35].mxu1  ;;  %v1664_v59 = vadd.f32 %v1642_v35, %v1512_v39 }
 0x2db   : > { %v1665_v61 = vadd.f32 %v1645_v42, %v1513_v41 }
 0x2dc   : > { %v1935_v62 = vpop.f32.mrb[40].mxu0 }
 0x2dd   : > { %v2979_v1 = vpop.f32.mrb[41].mxu0 }
 0x2de   : > { %v1498_v48 = vpop.f32.mrb[36].mxu1  ;;  %v1938_v4 = vpop.f32.mrb[42].mxu0 }
 0x2df   : > { %v1514_v2 = vadd.f32 %v1498_v48, %v1374_v8  ;;  %v2899_v3 = vpop.f32.mrb[37].mxu1  ;;  %v2980_v6 = vpop.f32.mrb[43].mxu0 }
 0x2e0   : > { %v1501_v5 = vpop.f32.mrb[38].mxu1 }
 0x2e1   : > { %v1515_v7 = vadd.f32 %v1501_v5, %v1375_v45  ;;  %v2900_v9 = vpop.f32.mrb[39].mxu1  ;;  %v1666_v0 = vadd.f32 %v1650_v25, %v1514_v2 }
 0x2e3   : > { %v1667_v51 = vadd.f32 %v1653_v29, %v1515_v7 }
 0x2e4   : > { %v1943_v10 = vpop.f32.mrb[44].mxu0 }
 0x2e5   : > { %v2983_v12 = vpop.f32.mrb[45].mxu0 }
 0x2e6   : > { %v1506_v11 = vpop.f32.mrb[40].mxu1  ;;  %v1946_v15 = vpop.f32.mrb[46].mxu0 }
 0x2e7   : > { %v1516_v13 = vadd.f32 %v1506_v11, %v1376_v14  ;;  %v2903_v63 = vpop.f32.mrb[41].mxu1  ;;  %v2984_v16 = vpop.f32.mrb[47].mxu0 }
 0x2e8   : > { %v1509_v56 = vpop.f32.mrb[42].mxu1 }
 0x2e9   : > { %v2904_v18 = vpop.f32.mrb[43].mxu1  ;;  %v1668_v19 = vadd.f32 %v1658_v53, %v1516_v13 }
 0x2ec   : > { %v1951_v17 = vpop.f32.mrb[48].mxu0 }
 0x2ed   : > { %v2987_v21 = vpop.f32.mrb[49].mxu0 }
 0x2ee   : > { %v1954_v24 = vpop.f32.mrb[50].mxu0 }
 0x2ef   : > { %v2988_v26 = vpop.f32.mrb[51].mxu0 }
 0x2f6   : > { %v1780_v28 = vpop.f32.mrb[44].mxu1 }
 0x2f7   : > { %v1802_v23 = vadd.f32 %v1780_v28, %v1664_v59  ;;  %v2951_v34 = vpop.f32.mrb[45].mxu1 }
 0x2f8   : > { %v1783_v27 = vpop.f32.mrb[46].mxu1 }
 0x2f9   : > { %v1803_v35 = vadd.f32 %v1783_v27, %v1665_v61  ;;  %v2952_v33 = vpop.f32.mrb[47].mxu1  ;;  %v1957_v20 = vadd.f32 %v1935_v62, %v1802_v23  ;;  %v2611_v61 = vld [vmem:[#allocation11] ss:$0 sm:$0xff] }
 0x2fb   : > { %v1958_v36 = vadd.f32 %v1938_v4, %v1803_v35 }
 0x2fc   : > { %v2225_v40 = vpop.f32.mrb[52].mxu0 }
 0x2fd   : > { %v3035_v43 = vpop.f32.mrb[53].mxu0 }
 0x2fe   : > { %v1788_v42 = vpop.f32.mrb[48].mxu1  ;;  %v2228_v30 = vpop.f32.mrb[54].mxu0 }
 0x2ff   : > { %v1804_v44 = vadd.f32 %v1788_v42, %v1666_v0  ;;  %v2955_v22 = vpop.f32.mrb[49].mxu1  ;;  %v3036_v45 = vpop.f32.mrb[55].mxu0 }
 0x300   : > { %v1791_v8 = vpop.f32.mrb[50].mxu1 }
 0x301   : > { %v1805_v25 = vadd.f32 %v1791_v8, %v1667_v51  ;;  %v2956_v46 = vpop.f32.mrb[51].mxu1  ;;  %v1959_v55 = vadd.f32 %v1943_v10, %v1804_v44 }
 0x303   : > { %v1960_v47 = vadd.f32 %v1946_v15, %v1805_v25 }
 0x304   : > { %v2233_v49 = vpop.f32.mrb[56].mxu0 }
 0x305   : > { %v3039_v50 = vpop.f32.mrb[57].mxu0 }
 0x306   : > { %v1796_v29 = vpop.f32.mrb[52].mxu1  ;;  %v2236_v14 = vpop.f32.mrb[58].mxu0 }
 0x307   : > { %v1806_v52 = vadd.f32 %v1796_v29, %v1668_v19  ;;  %v2959_v32 = vpop.f32.mrb[53].mxu1  ;;  %v3040_v31 = vpop.f32.mrb[59].mxu0 }
 0x308   : > { %v1799_v53 = vpop.f32.mrb[54].mxu1 }
 0x309   : > { %v2960_v38 = vpop.f32.mrb[55].mxu1  ;;  %v1961_v37 = vadd.f32 %v1951_v17, %v1806_v52 }
 0x30c   : > { %v2241_v57 = vpop.f32.mrb[60].mxu0 }
 0x30d   : > { %v3043_v39 = vpop.f32.mrb[61].mxu0 }
 0x30e   : > { %v2244_v58 = vpop.f32.mrb[62].mxu0 }
 0x30f   : > { %v3044_v60 = vpop.f32.mrb[63].mxu0 }
 0x316   : > { %v2073_v41 = vpop.f32.mrb[56].mxu1 }
 0x317   : > { %v2095_v54 = vadd.f32 %v2073_v41, %v1957_v20  ;;  %v3007_v59 = vpop.f32.mrb[57].mxu1 }
 0x318   : > { %v2076_v62 = vpop.f32.mrb[58].mxu1 }
 0x319   : > { %v2247_v48 = vadd.f32 %v2225_v40, %v2095_v54  ;;  %v2096_v1 = vadd.f32 %v2076_v62, %v1958_v36  ;;  %v3008_v2 = vpop.f32.mrb[59].mxu1 }
 0x31b   : > { %v2259_v3 = vadd.f32 %v2611_v61, %v2247_v48  ;;  %v2248_v4 = vadd.f32 %v2228_v30, %v2096_v1 }
 0x31d   : > { %v2264_v5 = vmul.f32 0.01, %v2259_v3  ;;  %v2260_v6 = vadd.f32 %v2611_v61, %v2248_v4 }
 0x31e   : > { %v2081_v7 = vpop.f32.mrb[60].mxu1 }
 0x31f   : > { %v2269_v9 = vmax.f32 %v2259_v3, %v2264_v5  ;;  %v2265_v0 = vmul.f32 0.01, %v2260_v6  ;;  %v2097_v51 = vadd.f32 %v2081_v7, %v1959_v55  ;;  %v3011_v10 = vpop.f32.mrb[61].mxu1 }
 0x320   : > { %v2084_v11 = vpop.f32.mrb[62].mxu1 }
 0x321   : > { %v2274_v12 = vpack.c.bf16 %v2269_v9, %v2269_v9  ;;  %v2270_v13 = vmax.f32 %v2260_v6, %v2265_v0  ;;  %v2249_v63 = vadd.f32 %v2233_v49, %v2097_v51  ;;  %v2098_v15 = vadd.f32 %v2084_v11, %v1960_v47  ;;  %v3012_v56 = vpop.f32.mrb[63].mxu1 }
 0x323   : > { %2276 = vst.msk [vmem:[%s4284_s29] sm:$0xf] %vm2275_vm2, %v2274_v12  ;;  %v2628_v16 = vpack.c.bf16 %v2270_v13, %v2270_v13  ;;  %v2261_v18 = vadd.f32 %v2611_v61, %v2249_v63  ;;  %v2250_v19 = vadd.f32 %v2236_v14, %v2098_v15 }
 0x325   : > { %v2286_v17 = vshrl.u32 %v2628_v16, 16  ;;  %v2289_v21 = vshll.u32 %v2628_v16, 16  ;;  %v2266_v24 = vmul.f32 0.01, %v2261_v18  ;;  %v2262_v26 = vadd.f32 %v2611_v61, %v2250_v19 }
 0x326   : > { %v2089_v28 = vpop.f32.mrb[64].mxu1 }
 0x327   : > { %v2288_v23 = vrot.slane %v2286_v17, 4  ;;  %v2291_v34 = vrot.slane %v2289_v21, 5  ;;  %v2271_v27 = vmax.f32 %v2261_v18, %v2266_v24  ;;  %v2267_v35 = vmul.f32 0.01, %v2262_v26  ;;  %v3015_v33 = vpop.f32.mrb[65].mxu1 }
 0x328   : > { %v2099_v20 = vadd.f32 %v2089_v28, %v1961_v37  ;;  %v2092_v36 = vpop.f32.mrb[66].mxu1 }
 0x329   : > { %v2292_v40 = vor.u32 %v2291_v34, %v2288_v23  ;;  %v2629_v42 = vpack.c.bf16 %v2271_v27, %v2271_v27  ;;  %v2272_v43 = vmax.f32 %v2262_v26, %v2267_v35  ;;  %v3016_v44 = vpop.f32.mrb[67].mxu1 }
 0x32a   : > { %v2251_v22 = vadd.f32 %v2241_v57, %v2099_v20 }
 0x32b   : > { %v2295_v30 = vshll.u32 %v2629_v42, 16  ;;  %v2631_v8 = vpack.c.bf16 %v2272_v43, %v2272_v43  ;;  %v2293_v45 = vrot.slane %v2292_v40, 4  ;;  %v2617_v25 = vrot.slane %v2629_v42, 9 }
 0x32c   : > { %v2263_v46 = vadd.f32 %v2611_v61, %v2251_v22 }
 0x32d   : > { %v2297_v55 = vrot.slane %v2295_v30, 5  ;;  %v2312_v47 = vrot.slane %v2631_v8, 5  ;;  %v2327_v49 = vshrl.u32 %v2631_v8, 16  ;;  %v2330_v29 = vshll.u32 %v2631_v8, 16 }
 0x32e   : > { %v2268_v50 = vmul.f32 0.01, %v2263_v46 }
 0x32f   : > { %v2298_v52 = vsel %vm2284_vm9, %v2293_v45, %v2297_v55  ;;  %v2313_v32 = vsel %vm2309_vm8, %v2617_v25, %v2312_v47  ;;  %v2329_v14 = vrot.slane %v2327_v49, 5  ;;  %v2332_v53 = vrot.slane %v2330_v29, 6 }
 0x330   : > { %2614 = vst.msk [vmem:[%s4284_s29 + $0x4] sm:$0xf] %vm2275_vm2, %v2298_v52  ;;  %2618 = vst.msk [vmem:[%s4284_s29 + $0x8] sm:$0xf] %vm2275_vm2, %v2313_v32  ;;  %v2273_v31 = vmax.f32 %v2263_v46, %v2268_v50 }
 0x331   : > { %v2333_v37 = vor.u32 %v2332_v53, %v2329_v14 }
 0x332   : > { %v2633_v38 = vpack.c.bf16 %v2273_v31, %v2273_v31 }
 0x333   : > { %v2334_v41 = vrot.slane %v2333_v37, 4 }
 0x334   : > { %v2336_v57 = vshrl.u32 %v2633_v38, 16  ;;  %v2339_v39 = vshll.u32 %v2633_v38, 16 }
 0x336   : > { %v2338_v58 = vrot.slane %v2336_v57, 5  ;;  %v2341_v60 = vrot.slane %v2339_v39, 6 }
 0x338   : > { %v2342_v54 = vor.u32 %v2341_v60, %v2338_v58 }
 0x33a   : > { %v2343_v59 = vsel %vm2325_vm0, %v2334_v41, %v2342_v54 }
 0x33b   : > { %2621 = vst.msk [vmem:[%s4284_s29 + $0xc] sm:$0xf] %vm2275_vm2, %v2343_v59 }
 0x33c   : > { %3434 = shalt.err (!%p3431_p1)
}
 0x33d   : > { %s3435_s28 = scalar_lea.hbm %s4301_s21, 256  ;;  %s3439_s22 = scalar_lea.hbm %s4423_s14, 1024 }
 0x33e   : > { %p3436_p12 = scmp.ne.s32.totalorder %s4301_s21, %s3435_s28  ;;  %p3440_p13 = scmp.lt.u32.totalorder %s4301_s21, %s4423_s14 }
 0x33f   : > { %p3441_p4 = scmp.lt.u32.totalorder %s3439_s22, %s3435_s28  ;;  %p3443_p8 = scmp.lt.u32.totalorder %s3435_s28, %s4301_s21 }
 0x340   : > { %p3437_p6 = pnand %p3436_p12, %p3766_p3 }
 0x341   : > { %p3442_p9 = por %p3441_p4, %p3440_p13 }
 0x342   : > { %p3438_p2 = pneg %p3437_p6 }
 0x343   : > { %p3444_p10 = por %p3443_p8, %p3442_p9 }
 0x345   : > { %p3445_p0 = pnand %p3444_p10, %p3438_p2 }
 0x347   : > { %3448 = shalt.err (!%p3445_p0)
}
 0x348   : > { %s3540_s11 = smov 64   ;;  %s3541_s1 = smov 4  }
 0x349   : > { %3079 = dma.vmem_to_hbm [thread:$0]  (%p3766_p3), %s4303_s13, 256, %s4301_s21, %s2348_s5, %s3540_s11, %s3540_s11, %s3541_s1  }
 0x34a PF: > { %s4424_s3 = sld [smem:[#allocation17_spill]]  ;;  %s4425_s9 = sld [smem:[#allocation19_spill]] }
 0x34b   : > { %p3111_p5 = scmp.ge.s32.totalorder %s3527_s25, 2 }
 0x350   : > { %s2378_s12 = sand.u32 1, %s4424_s3   ;;  %p4426_p7 = scmp.ne.s32.totalorder %s4425_s9, 0 }
 0x351   : > { %s2379_s18 = scalar_lea.sflag [#allocation5], %s2378_s12 }
 0x352   : > { %p3099_p11 = pnand %p3111_p5, %p4426_p7 }
 0x354   : > { %3494 = dma.done.wait (!%p3099_p11), %s2379_s18, 256  }
 0x355   : > { %3496 = vsyncadd (!%p3099_p11), %s2379_s18, 4294967040  ;;  %s23_s25 = sadd.s32 1, %s3527_s25   ;;  %s4427_s18 = smov %s3503_s19 }
 0x356   : > { %p20_p1 = scmp.ge.s32.totalorder %s23_s25, 6   ;;  %s4428_s19 = smov %s3507_s20 }
 0x357   : > { %s4429_s20 = smov %s3785_s16  ;;  %s4430_s21 = smov %s3519_s23 }
 0x358   : > { %s4431_s22 = smov %s3523_s24  ;;  %s4432_s23 = smov %s4435_s8 }
 0x359   : > { %s4433_s24 = smov %s4439_s26  ;;  %22 = sbr.rel (!%p20_p1) target bundleno = 14 (0xe), region = 115 }
 0x360   :  { %2384 = vsyncpa [#allocation4], 1 }
 0x361   :  { %2386 = vsyncpa [#allocation4 + $0x1], 1 }
 0x362   :  { %2387 = vsyncpa [#allocation7], 1 }
 0x363   :  { %2388 = vsyncpa [#allocation10], 1 }
 0x364   :  { %2389 = vsyncpa [#allocation5], 1 }
 0x365   :  { %2391 = vsyncpa [#allocation5 + $0x1], 1 }

</bundles_post_ra>
